<compile_context>
chip_gen: v6e
topology: v6e:2x2x1
jax: 0.10.0
libtpu: 0.0.40
codegen_flags: <defaults>
</compile_context>

<pallas_src>
import jax
import jax.numpy as jnp
from jax.experimental import pallas as pl
from jax.experimental.pallas import tpu as pltpu


# --------------------------------------------------------------------------- #
# Kernel
# --------------------------------------------------------------------------- #
def _make_aster_kernel(Bt, H, W, C, P, compute_dtype):
    HW = H * W
    M = Bt * HW

    def kernel(x_ref, w1_ref, w2_ref, b1_ref, b2_ref, o_ref, slab_ref):
        # x_ref : (Bt, H*W, C)   pixel-major activation block
        # w1_ref: (C, P)         1x1 conv weight, BN1 scale folded
        # w2_ref: (9*C, P)       3x3 conv weight (tap-major K), BN2 scale folded
        # b1/b2 : (1, P)         folded BN biases (f32)
        # o_ref : (Bt, H*W, P)   pixel-major output block
        # slab  : (Bt, H, W, 9P) VMEM scratch holding the im2col slab

        # ---- conv1x1 (+BN1 bias) + ReLU: one MXU matmul over all pixels -----
        x_px = x_ref[...].reshape(M, C)                     # leading-dim merge (free)
        h1 = jnp.dot(x_px, w1_ref[...], preferred_element_type=jnp.float32)
        h1 = jnp.maximum(h1 + b1_ref[...], 0.0)
        h1c = h1.astype(compute_dtype).reshape(Bt, H, W, P)  # leading split (free)

        # ---- im2col slab assembly in VMEM scratch ----------------------------
        # For each of the 9 taps store the (ky-1, kx-1)-shifted h1 into its
        # lane-column block; the pad=1 halo rows/cols get explicit zero strips.
        # Every slab element is rewritten each grid step (no stale data, safe
        # with "parallel" grid semantics / per-core scratch).
        zrow = jnp.zeros((Bt, 1, W, P), compute_dtype)
        zcol = jnp.zeros((Bt, H, 1, P), compute_dtype)
        for ky in range(3):
            dy = ky - 1
            hv = H - abs(dy)
            yd, ys = max(0, -dy), max(0, dy)                 # dst / src row starts
            for kx in range(3):
                dx = kx - 1
                wv = W - abs(dx)
                xd, xs = max(0, -dx), max(0, dx)             # dst / src col starts
                col = (ky * 3 + kx) * P
                slab_ref[:, yd:yd + hv, xd:xd + wv, col:col + P] = (
                    h1c[:, ys:ys + hv, xs:xs + wv, :])
                if dy < 0:
                    slab_ref[:, 0:1, :, col:col + P] = zrow
                elif dy > 0:
                    slab_ref[:, H - 1:H, :, col:col + P] = zrow
                if dx < 0:
                    slab_ref[:, :, 0:1, col:col + P] = zcol
                elif dx > 0:
                    slab_ref[:, :, W - 1:W, col:col + P] = zcol

        # ---- conv3x3 (+BN2 scale folded) as ONE K=9*P matmul ------------------
        slab = slab_ref[...].reshape(M, 9 * P)               # leading-dim merge (free)
        acc = jnp.dot(slab, w2_ref[...], preferred_element_type=jnp.float32)

        # ---- BN2 bias + residual + ReLU, pixel-major store --------------------
        out = jnp.maximum(acc + b2_ref[...] + x_px.astype(jnp.float32), 0.0)
        o_ref[...] = out.reshape(Bt, HW, P).astype(o_ref.dtype)

    return kernel


# --------------------------------------------------------------------------- #
# Wrappers
# --------------------------------------------------------------------------- #
def _fold_bn(bn, eps):
    scale = bn["gamma"] / jnp.sqrt(bn["var"] + eps)
    bias = bn["beta"] - bn["mean"] * scale
    return scale, bias


def aster_block_pallas_nhwc(x_nhwc, w1, w2, bn1, bn2, eps=1e-5,
                            compute_dtype=jnp.bfloat16, out_dtype=None):
    """AsterBlock forward in NHWC.  x: (B,H,W,C), w1: (P,C,1,1), w2: (P,P,3,3).

    compute_dtype is used for the MXU matmul inputs and the HBM activation I/O
    (accumulation and elementwise math stay f32).  The bfloat16 default needs a
    ~1e-2 tolerance; float32 matches the PyTorch eval-mode block to ~1e-5."""
    B, H, W, C = x_nhwc.shape
    P = w1.shape[0]
    assert C == P, "residual add requires inplanes == planes when downsample=None"
    assert w1.shape == (P, C, 1, 1) and w2.shape == (P, P, 3, 3)
    if out_dtype is None:
        out_dtype = compute_dtype
    HW = H * W

    # Fold BN scales into the conv weights (one-time, wrapper side).
    s1, b1 = _fold_bn(bn1, eps)
    s2, b2 = _fold_bn(bn2, eps)
    w1_k = (jnp.transpose(w1[:, :, 0, 0], (1, 0)) * s1[None, :]).astype(compute_dtype)
    w2_k = (jnp.transpose(w2, (2, 3, 1, 0)).reshape(9 * C, P)
            * s2[None, :]).astype(compute_dtype)
    b1_k = b1.reshape(1, P).astype(jnp.float32)
    b2_k = b2.reshape(1, P).astype(jnp.float32)

    # Pixel-major presentation: (B, H*W, C) is a free reshape of NHWC.
    x_pm = x_nhwc.astype(compute_dtype).reshape(B, HW, C)

    # Batch tiling: ~2 MiB activation blocks; >= 2 grid steps whenever B >= 2
    # so both v7x TensorCores get work.  cdiv grid (no divisor search).
    in_item = jnp.dtype(compute_dtype).itemsize
    out_item = jnp.dtype(out_dtype).itemsize
    per_img = HW * C * in_item
    Bt = max(1, (2 * 1024 * 1024) // per_img)
    if B >= 2:
        Bt = min(Bt, pl.cdiv(B, 2))
    Bt = int(min(Bt, B))
    nb = pl.cdiv(B, Bt)

    # Explicit VMEM budget (v7x has only 64 MiB physical per core).
    wt_bytes = (C * P + 9 * C * P) * in_item + 2 * P * 4
    blk_bytes = Bt * HW * (C * in_item + P * out_item)
    slab_bytes = Bt * HW * 9 * P * in_item
    interm_bytes = 4 * Bt * HW * P * 4          # f32 h1 / acc / out temporaries
    est = 2 * blk_bytes + 2 * wt_bytes + slab_bytes + interm_bytes
    vmem_limit = int(min(max(2 * est, 32 * 1024 * 1024), 64 * 1024 * 1024))

    kernel = _make_aster_kernel(Bt, H, W, C, P, compute_dtype)

    def run(weight_pipeline_mode):
        wkw = ({} if weight_pipeline_mode is None
               else {"pipeline_mode": weight_pipeline_mode})
        return pl.pallas_call(
            kernel,
            out_shape=jax.ShapeDtypeStruct((B, HW, P), out_dtype),
            grid_spec=pltpu.PrefetchScalarGridSpec(
                num_scalar_prefetch=0,
                grid=(nb,),
                in_specs=[
                    pl.BlockSpec((Bt, HW, C), lambda b: (b, 0, 0)),
                    pl.BlockSpec((C, P), lambda b: (0, 0), **wkw),
                    pl.BlockSpec((9 * C, P), lambda b: (0, 0), **wkw),
                    pl.BlockSpec((1, P), lambda b: (0, 0), **wkw),
                    pl.BlockSpec((1, P), lambda b: (0, 0), **wkw),
                ],
                out_specs=pl.BlockSpec((Bt, HW, P), lambda b: (b, 0, 0)),
                scratch_shapes=[pltpu.VMEM((Bt, H, W, 9 * P), compute_dtype)],
            ),
            compiler_params=pltpu.CompilerParams(
                dimension_semantics=("parallel",),
                vmem_limit_bytes=vmem_limit),
        )(x_pm, w1_k, w2_k, b1_k, b2_k)

    try:
        # Constant-index weight/bias blocks: single-buffer them (halves their
        # resident VMEM; the C=512 3x3 weight is ~4.7 MB in bf16).
        out_pm = run(pl.Buffered(1))
    except Exception:
        # Fallback if this jax build does not support BlockSpec.pipeline_mode.
        out_pm = run(None)

    return out_pm.reshape(B, H, W, P)


def aster_block_pallas(x_nchw, w1, w2, bn1, bn2, eps=1e-5,
                       compute_dtype=jnp.bfloat16, out_dtype=None):
    """NCHW adapter matching the PyTorch convention.  For a real network keep
    everything NHWC and call aster_block_pallas_nhwc directly (the two
    transposes here are full HBM relayout passes)."""
    x_nhwc = jnp.transpose(x_nchw, (0, 2, 3, 1))
    out_nhwc = aster_block_pallas_nhwc(x_nhwc, w1, w2, bn1, bn2, eps,
                                       compute_dtype, out_dtype)
    return jnp.transpose(out_nhwc, (0, 3, 1, 2))


def aster_block_reference(x_nchw, w1, w2, bn1, bn2, eps=1e-5):
    """Pure-JAX reference (lax convs) mirroring the PyTorch forward (eval BN)."""
    def bn(y, p):
        scale = p["gamma"] / jnp.sqrt(p["var"] + eps)
        bias = p["beta"] - p["mean"] * scale
        return y * scale[None, :, None, None] + bias[None, :, None, None]

    dn = jax.lax.conv_dimension_numbers(x_nchw.shape, w1.shape,
                                        ("NCHW", "OIHW", "NCHW"))
    out = jax.lax.conv_general_dilated(x_nchw, w1, (1, 1), "VALID",
                                       dimension_numbers=dn)
    out = jax.nn.relu(bn(out, bn1))
    out = jax.lax.conv_general_dilated(out, w2, (1, 1), ((1, 1), (1, 1)),
                                       dimension_numbers=dn)
    out = bn(out, bn2)
    return jax.nn.relu(out + x_nchw)


# --------------------------------------------------------------------------- #
# Self-test
# --------------------------------------------------------------------------- #
if __name__ == "__main__":
    key = jax.random.PRNGKey(0)
    B, C, H, W = 2, 32, 8, 8        # one layer1 AsterBlock (inplanes = planes = 32)
    P = C

    ks = jax.random.split(key, 9)
    x = jax.random.normal(ks[0], (B, C, H, W), jnp.float32)
    w1 = 0.1 * jax.random.normal(ks[1], (P, C, 1, 1), jnp.float32)
    w2 = 0.1 * jax.random.normal(ks[2], (P, P, 3, 3), jnp.float32)
    bn1 = {
        "gamma": 1.0 + 0.1 * jax.random.normal(ks[3], (P,), jnp.float32),
        "beta": 0.1 * jax.random.normal(ks[4], (P,), jnp.float32),
        "mean": 0.1 * jax.random.normal(ks[5], (P,), jnp.float32),
        "var": 1.0 + 0.1 * jnp.abs(jax.random.normal(ks[6], (P,), jnp.float32)),
    }
    bn2 = {
        "gamma": 1.0 + 0.1 * jax.random.normal(ks[7], (P,), jnp.float32),
        "beta": 0.1 * jax.random.normal(ks[8], (P,), jnp.float32),
        "mean": jnp.zeros((P,), jnp.float32),
        "var": jnp.ones((P,), jnp.float32),
    }

    ref = jax.block_until_ready(aster_block_reference(x, w1, w2, bn1, bn2))

    # Exact path (f32 matmul inputs): must match the reference tightly.
    out_f32 = jax.block_until_ready(
        aster_block_pallas(x, w1, w2, bn1, bn2, compute_dtype=jnp.float32))
    assert out_f32.shape == (B, P, H, W)
    err32 = jnp.max(jnp.abs(out_f32 - ref))
    assert jnp.allclose(out_f32, ref, atol=1e-4, rtol=1e-4), \
        f"f32 max abs err = {err32}"

    # Default fast path (bf16 matmul inputs / bf16 output, f32 accumulation).
    out_bf16 = jax.block_until_ready(aster_block_pallas(x, w1, w2, bn1, bn2))
    assert out_bf16.shape == (B, P, H, W) and out_bf16.dtype == jnp.bfloat16
    err16 = jnp.max(jnp.abs(out_bf16.astype(jnp.float32) - ref))
    assert err16 < 0.15, f"bf16 max abs err = {err16}"

    print("KERNEL_OK")
</pallas_src>

<mosaic_0001>
module attributes {stable_mosaic.version = 11 : i64} {
  func.func @kernel(%arg0: i32, %arg1: memref<1x64x32xf32, #tpu.memory_space<vmem>>, %arg2: memref<32x32xf32, #tpu.memory_space<vmem>>, %arg3: memref<288x32xf32, #tpu.memory_space<vmem>>, %arg4: memref<1x32xf32, #tpu.memory_space<vmem>>, %arg5: memref<1x32xf32, #tpu.memory_space<vmem>>, %arg6: memref<1x64x32xf32, #tpu.memory_space<vmem>>, %arg7: memref<1x8x8x288xf32, #tpu.memory_space<vmem>>) attributes {dimension_semantics = [#tpu.dimension_semantics<parallel>], iteration_bounds = array<i64: 2>, scalar_prefetch = 0 : i64, scratch_operands = 1 : i64, tpu.core_type = #tpu.core_type<tc>, window_params = [{transform_indices = @transform_0, window_bounds = array<i64: 1, 64, 32>}, {pipeline_mode = #tpu.pipeline_mode<synchronous>, transform_indices = @transform_1, window_bounds = array<i64: 32, 32>}, {pipeline_mode = #tpu.pipeline_mode<synchronous>, transform_indices = @transform_2, window_bounds = array<i64: 288, 32>}, {pipeline_mode = #tpu.pipeline_mode<synchronous>, transform_indices = @transform_3, window_bounds = array<i64: 1, 32>}, {pipeline_mode = #tpu.pipeline_mode<synchronous>, transform_indices = @transform_4, window_bounds = array<i64: 1, 32>}, {transform_indices = @transform_5, window_bounds = array<i64: 1, 64, 32>}]} {
    %c0 = arith.constant 0 : index
    %c0_0 = arith.constant 0 : index
    %c0_1 = arith.constant 0 : index
    %0 = vector.load %arg1[%c0, %c0_0, %c0_1] : memref<1x64x32xf32, #tpu.memory_space<vmem>>, vector<1x64x32xf32>
    %1 = vector.shape_cast %0 : vector<1x64x32xf32> to vector<64x32xf32>
    %c0_2 = arith.constant 0 : index
    %c0_3 = arith.constant 0 : index
    %2 = vector.load %arg2[%c0_2, %c0_3] : memref<32x32xf32, #tpu.memory_space<vmem>>, vector<32x32xf32>
    %cst = arith.constant dense<0.000000e+00> : vector<64x32xf32>
    %3 = tpu.matmul %1, %2, %cst {dimension_numbers = #tpu.dot_dimension_numbers<[1], [0], [0], [1], [0, 0, 1, 1], [], []>} : vector<64x32xf32>, vector<32x32xf32>, vector<64x32xf32> -> vector<64x32xf32>
    %c0_4 = arith.constant 0 : index
    %c0_5 = arith.constant 0 : index
    %4 = vector.load %arg4[%c0_4, %c0_5] : memref<1x32xf32, #tpu.memory_space<vmem>>, vector<1x32xf32>
    %5 = vector.broadcast %4 : vector<1x32xf32> to vector<64x32xf32>
    %6 = arith.addf %3, %5 : vector<64x32xf32>
    %cst_6 = arith.constant 0.000000e+00 : f32
    %7 = vector.broadcast %cst_6 : f32 to vector<64x32xf32>
    %8 = arith.maximumf %6, %7 : vector<64x32xf32>
    %9 = vector.shape_cast %8 : vector<64x32xf32> to vector<1x8x8x32xf32>
    %cst_7 = arith.constant 0.000000e+00 : f32
    %10 = vector.broadcast %cst_7 : f32 to vector<1x1x8x32xf32>
    %cst_8 = arith.constant 0.000000e+00 : f32
    %11 = vector.broadcast %cst_8 : f32 to vector<1x8x1x32xf32>
    %12 = vector.extract_strided_slice %9 {offsets = [0, 0, 0, 0], sizes = [1, 7, 7, 32], strides = [1, 1, 1, 1]} : vector<1x8x8x32xf32> to vector<1x7x7x32xf32>
    %c0_9 = arith.constant 0 : index
    %c1 = arith.constant 1 : index
    %c1_10 = arith.constant 1 : index
    %c0_11 = arith.constant 0 : index
    %13 = vector.load %arg7[%c0_9, %c1, %c1_10, %c0_11] : memref<1x8x8x288xf32, #tpu.memory_space<vmem>>, vector<1x7x7x32xf32>
    tpu.vector_store %arg7[%c0_9, %c1, %c1_10, %c0_11], %12 {strides = array<i32>} : memref<1x8x8x288xf32, #tpu.memory_space<vmem>>, vector<1x7x7x32xf32>,
    %c0_12 = arith.constant 0 : index
    %c0_13 = arith.constant 0 : index
    %c0_14 = arith.constant 0 : index
    %c0_15 = arith.constant 0 : index
    %14 = vector.load %arg7[%c0_12, %c0_13, %c0_14, %c0_15] : memref<1x8x8x288xf32, #tpu.memory_space<vmem>>, vector<1x1x8x32xf32>
    tpu.vector_store %arg7[%c0_12, %c0_13, %c0_14, %c0_15], %10 {strides = array<i32>} : memref<1x8x8x288xf32, #tpu.memory_space<vmem>>, vector<1x1x8x32xf32>,
    %c0_16 = arith.constant 0 : index
    %c0_17 = arith.constant 0 : index
    %c0_18 = arith.constant 0 : index
    %c0_19 = arith.constant 0 : index
    %15 = vector.load %arg7[%c0_16, %c0_17, %c0_18, %c0_19] : memref<1x8x8x288xf32, #tpu.memory_space<vmem>>, vector<1x8x1x32xf32>
    tpu.vector_store %arg7[%c0_16, %c0_17, %c0_18, %c0_19], %11 {strides = array<i32>} : memref<1x8x8x288xf32, #tpu.memory_space<vmem>>, vector<1x8x1x32xf32>,
    %16 = vector.extract_strided_slice %9 {offsets = [0, 0, 0, 0], sizes = [1, 7, 8, 32], strides = [1, 1, 1, 1]} : vector<1x8x8x32xf32> to vector<1x7x8x32xf32>
    %c0_20 = arith.constant 0 : index
    %c1_21 = arith.constant 1 : index
    %c0_22 = arith.constant 0 : index
    %c32 = arith.constant 32 : index
    %17 = vector.load %arg7[%c0_20, %c1_21, %c0_22, %c32] : memref<1x8x8x288xf32, #tpu.memory_space<vmem>>, vector<1x7x8x32xf32>
    tpu.vector_store %arg7[%c0_20, %c1_21, %c0_22, %c32], %16 {strides = array<i32>} : memref<1x8x8x288xf32, #tpu.memory_space<vmem>>, vector<1x7x8x32xf32>,
    %c0_23 = arith.constant 0 : index
    %c0_24 = arith.constant 0 : index
    %c0_25 = arith.constant 0 : index
    %c32_26 = arith.constant 32 : index
    %18 = vector.load %arg7[%c0_23, %c0_24, %c0_25, %c32_26] : memref<1x8x8x288xf32, #tpu.memory_space<vmem>>, vector<1x1x8x32xf32>
    tpu.vector_store %arg7[%c0_23, %c0_24, %c0_25, %c32_26], %10 {strides = array<i32>} : memref<1x8x8x288xf32, #tpu.memory_space<vmem>>, vector<1x1x8x32xf32>,
    %19 = vector.extract_strided_slice %9 {offsets = [0, 0, 1, 0], sizes = [1, 7, 7, 32], strides = [1, 1, 1, 1]} : vector<1x8x8x32xf32> to vector<1x7x7x32xf32>
    %c0_27 = arith.constant 0 : index
    %c1_28 = arith.constant 1 : index
    %c0_29 = arith.constant 0 : index
    %c64 = arith.constant 64 : index
    %20 = vector.load %arg7[%c0_27, %c1_28, %c0_29, %c64] : memref<1x8x8x288xf32, #tpu.memory_space<vmem>>, vector<1x7x7x32xf32>
    tpu.vector_store %arg7[%c0_27, %c1_28, %c0_29, %c64], %19 {strides = array<i32>} : memref<1x8x8x288xf32, #tpu.memory_space<vmem>>, vector<1x7x7x32xf32>,
    %c0_30 = arith.constant 0 : index
    %c0_31 = arith.constant 0 : index
    %c0_32 = arith.constant 0 : index
    %c64_33 = arith.constant 64 : index
    %21 = vector.load %arg7[%c0_30, %c0_31, %c0_32, %c64_33] : memref<1x8x8x288xf32, #tpu.memory_space<vmem>>, vector<1x1x8x32xf32>
    tpu.vector_store %arg7[%c0_30, %c0_31, %c0_32, %c64_33], %10 {strides = array<i32>} : memref<1x8x8x288xf32, #tpu.memory_space<vmem>>, vector<1x1x8x32xf32>,
    %c0_34 = arith.constant 0 : index
    %c0_35 = arith.constant 0 : index
    %c7 = arith.constant 7 : index
    %c64_36 = arith.constant 64 : index
    %22 = vector.load %arg7[%c0_34, %c0_35, %c7, %c64_36] : memref<1x8x8x288xf32, #tpu.memory_space<vmem>>, vector<1x8x1x32xf32>
    tpu.vector_store %arg7[%c0_34, %c0_35, %c7, %c64_36], %11 {strides = array<i32>} : memref<1x8x8x288xf32, #tpu.memory_space<vmem>>, vector<1x8x1x32xf32>,
    %23 = vector.extract_strided_slice %9 {offsets = [0, 0, 0, 0], sizes = [1, 8, 7, 32], strides = [1, 1, 1, 1]} : vector<1x8x8x32xf32> to vector<1x8x7x32xf32>
    %c0_37 = arith.constant 0 : index
    %c0_38 = arith.constant 0 : index
    %c1_39 = arith.constant 1 : index
    %c96 = arith.constant 96 : index
    %24 = vector.load %arg7[%c0_37, %c0_38, %c1_39, %c96] : memref<1x8x8x288xf32, #tpu.memory_space<vmem>>, vector<1x8x7x32xf32>
    tpu.vector_store %arg7[%c0_37, %c0_38, %c1_39, %c96], %23 {strides = array<i32>} : memref<1x8x8x288xf32, #tpu.memory_space<vmem>>, vector<1x8x7x32xf32>,
    %c0_40 = arith.constant 0 : index
    %c0_41 = arith.constant 0 : index
    %c0_42 = arith.constant 0 : index
    %c96_43 = arith.constant 96 : index
    %25 = vector.load %arg7[%c0_40, %c0_41, %c0_42, %c96_43] : memref<1x8x8x288xf32, #tpu.memory_space<vmem>>, vector<1x8x1x32xf32>
    tpu.vector_store %arg7[%c0_40, %c0_41, %c0_42, %c96_43], %11 {strides = array<i32>} : memref<1x8x8x288xf32, #tpu.memory_space<vmem>>, vector<1x8x1x32xf32>,
    %c0_44 = arith.constant 0 : index
    %c0_45 = arith.constant 0 : index
    %c0_46 = arith.constant 0 : index
    %c128 = arith.constant 128 : index
    %26 = vector.load %arg7[%c0_44, %c0_45, %c0_46, %c128] : memref<1x8x8x288xf32, #tpu.memory_space<vmem>>, vector<1x8x8x32xf32>
    tpu.vector_store %arg7[%c0_44, %c0_45, %c0_46, %c128], %9 {strides = array<i32>} : memref<1x8x8x288xf32, #tpu.memory_space<vmem>>, vector<1x8x8x32xf32>,
    %27 = vector.extract_strided_slice %9 {offsets = [0, 0, 1, 0], sizes = [1, 8, 7, 32], strides = [1, 1, 1, 1]} : vector<1x8x8x32xf32> to vector<1x8x7x32xf32>
    %c0_47 = arith.constant 0 : index
    %c0_48 = arith.constant 0 : index
    %c0_49 = arith.constant 0 : index
    %c160 = arith.constant 160 : index
    %28 = vector.load %arg7[%c0_47, %c0_48, %c0_49, %c160] : memref<1x8x8x288xf32, #tpu.memory_space<vmem>>, vector<1x8x7x32xf32>
    tpu.vector_store %arg7[%c0_47, %c0_48, %c0_49, %c160], %27 {strides = array<i32>} : memref<1x8x8x288xf32, #tpu.memory_space<vmem>>, vector<1x8x7x32xf32>,
    %c0_50 = arith.constant 0 : index
    %c0_51 = arith.constant 0 : index
    %c7_52 = arith.constant 7 : index
    %c160_53 = arith.constant 160 : index
    %29 = vector.load %arg7[%c0_50, %c0_51, %c7_52, %c160_53] : memref<1x8x8x288xf32, #tpu.memory_space<vmem>>, vector<1x8x1x32xf32>
    tpu.vector_store %arg7[%c0_50, %c0_51, %c7_52, %c160_53], %11 {strides = array<i32>} : memref<1x8x8x288xf32, #tpu.memory_space<vmem>>, vector<1x8x1x32xf32>,
    %30 = vector.extract_strided_slice %9 {offsets = [0, 1, 0, 0], sizes = [1, 7, 7, 32], strides = [1, 1, 1, 1]} : vector<1x8x8x32xf32> to vector<1x7x7x32xf32>
    %c0_54 = arith.constant 0 : index
    %c0_55 = arith.constant 0 : index
    %c1_56 = arith.constant 1 : index
    %c192 = arith.constant 192 : index
    %31 = vector.load %arg7[%c0_54, %c0_55, %c1_56, %c192] : memref<1x8x8x288xf32, #tpu.memory_space<vmem>>, vector<1x7x7x32xf32>
    tpu.vector_store %arg7[%c0_54, %c0_55, %c1_56, %c192], %30 {strides = array<i32>} : memref<1x8x8x288xf32, #tpu.memory_space<vmem>>, vector<1x7x7x32xf32>,
    %c0_57 = arith.constant 0 : index
    %c7_58 = arith.constant 7 : index
    %c0_59 = arith.constant 0 : index
    %c192_60 = arith.constant 192 : index
    %32 = vector.load %arg7[%c0_57, %c7_58, %c0_59, %c192_60] : memref<1x8x8x288xf32, #tpu.memory_space<vmem>>, vector<1x1x8x32xf32>
    tpu.vector_store %arg7[%c0_57, %c7_58, %c0_59, %c192_60], %10 {strides = array<i32>} : memref<1x8x8x288xf32, #tpu.memory_space<vmem>>, vector<1x1x8x32xf32>,
    %c0_61 = arith.constant 0 : index
    %c0_62 = arith.constant 0 : index
    %c0_63 = arith.constant 0 : index
    %c192_64 = arith.constant 192 : index
    %33 = vector.load %arg7[%c0_61, %c0_62, %c0_63, %c192_64] : memref<1x8x8x288xf32, #tpu.memory_space<vmem>>, vector<1x8x1x32xf32>
    tpu.vector_store %arg7[%c0_61, %c0_62, %c0_63, %c192_64], %11 {strides = array<i32>} : memref<1x8x8x288xf32, #tpu.memory_space<vmem>>, vector<1x8x1x32xf32>,
    %34 = vector.extract_strided_slice %9 {offsets = [0, 1, 0, 0], sizes = [1, 7, 8, 32], strides = [1, 1, 1, 1]} : vector<1x8x8x32xf32> to vector<1x7x8x32xf32>
    %c0_65 = arith.constant 0 : index
    %c0_66 = arith.constant 0 : index
    %c0_67 = arith.constant 0 : index
    %c224 = arith.constant 224 : index
    %35 = vector.load %arg7[%c0_65, %c0_66, %c0_67, %c224] : memref<1x8x8x288xf32, #tpu.memory_space<vmem>>, vector<1x7x8x32xf32>
    tpu.vector_store %arg7[%c0_65, %c0_66, %c0_67, %c224], %34 {strides = array<i32>} : memref<1x8x8x288xf32, #tpu.memory_space<vmem>>, vector<1x7x8x32xf32>,
    %c0_68 = arith.constant 0 : index
    %c7_69 = arith.constant 7 : index
    %c0_70 = arith.constant 0 : index
    %c224_71 = arith.constant 224 : index
    %36 = vector.load %arg7[%c0_68, %c7_69, %c0_70, %c224_71] : memref<1x8x8x288xf32, #tpu.memory_space<vmem>>, vector<1x1x8x32xf32>
    tpu.vector_store %arg7[%c0_68, %c7_69, %c0_70, %c224_71], %10 {strides = array<i32>} : memref<1x8x8x288xf32, #tpu.memory_space<vmem>>, vector<1x1x8x32xf32>,
    %37 = vector.extract_strided_slice %9 {offsets = [0, 1, 1, 0], sizes = [1, 7, 7, 32], strides = [1, 1, 1, 1]} : vector<1x8x8x32xf32> to vector<1x7x7x32xf32>
    %c0_72 = arith.constant 0 : index
    %c0_73 = arith.constant 0 : index
    %c0_74 = arith.constant 0 : index
    %c256 = arith.constant 256 : index
    %38 = vector.load %arg7[%c0_72, %c0_73, %c0_74, %c256] : memref<1x8x8x288xf32, #tpu.memory_space<vmem>>, vector<1x7x7x32xf32>
    tpu.vector_store %arg7[%c0_72, %c0_73, %c0_74, %c256], %37 {strides = array<i32>} : memref<1x8x8x288xf32, #tpu.memory_space<vmem>>, vector<1x7x7x32xf32>,
    %c0_75 = arith.constant 0 : index
    %c7_76 = arith.constant 7 : index
    %c0_77 = arith.constant 0 : index
    %c256_78 = arith.constant 256 : index
    %39 = vector.load %arg7[%c0_75, %c7_76, %c0_77, %c256_78] : memref<1x8x8x288xf32, #tpu.memory_space<vmem>>, vector<1x1x8x32xf32>
    tpu.vector_store %arg7[%c0_75, %c7_76, %c0_77, %c256_78], %10 {strides = array<i32>} : memref<1x8x8x288xf32, #tpu.memory_space<vmem>>, vector<1x1x8x32xf32>,
    %c0_79 = arith.constant 0 : index
    %c0_80 = arith.constant 0 : index
    %c7_81 = arith.constant 7 : index
    %c256_82 = arith.constant 256 : index
    %40 = vector.load %arg7[%c0_79, %c0_80, %c7_81, %c256_82] : memref<1x8x8x288xf32, #tpu.memory_space<vmem>>, vector<1x8x1x32xf32>
    tpu.vector_store %arg7[%c0_79, %c0_80, %c7_81, %c256_82], %11 {strides = array<i32>} : memref<1x8x8x288xf32, #tpu.memory_space<vmem>>, vector<1x8x1x32xf32>,
    %c0_83 = arith.constant 0 : index
    %c0_84 = arith.constant 0 : index
    %c0_85 = arith.constant 0 : index
    %c0_86 = arith.constant 0 : index
    %41 = vector.load %arg7[%c0_83, %c0_84, %c0_85, %c0_86] : memref<1x8x8x288xf32, #tpu.memory_space<vmem>>, vector<1x8x8x288xf32>
    %42 = vector.shape_cast %41 : vector<1x8x8x288xf32> to vector<64x288xf32>
    %c0_87 = arith.constant 0 : index
    %c0_88 = arith.constant 0 : index
    %43 = vector.load %arg3[%c0_87, %c0_88] : memref<288x32xf32, #tpu.memory_space<vmem>>, vector<288x32xf32>
    %cst_89 = arith.constant dense<0.000000e+00> : vector<64x32xf32>
    %44 = tpu.matmul %42, %43, %cst_89 {dimension_numbers = #tpu.dot_dimension_numbers<[1], [0], [0], [1], [0, 0, 1, 1], [], []>} : vector<64x288xf32>, vector<288x32xf32>, vector<64x32xf32> -> vector<64x32xf32>
    %c0_90 = arith.constant 0 : index
    %c0_91 = arith.constant 0 : index
    %45 = vector.load %arg5[%c0_90, %c0_91] : memref<1x32xf32, #tpu.memory_space<vmem>>, vector<1x32xf32>
    %46 = vector.broadcast %45 : vector<1x32xf32> to vector<64x32xf32>
    %47 = arith.addf %44, %46 : vector<64x32xf32>
    %48 = arith.addf %47, %1 : vector<64x32xf32>
    %cst_92 = arith.constant 0.000000e+00 : f32
    %49 = vector.broadcast %cst_92 : f32 to vector<64x32xf32>
    %50 = arith.maximumf %48, %49 : vector<64x32xf32>
    %51 = vector.shape_cast %50 : vector<64x32xf32> to vector<1x64x32xf32>
    %c0_93 = arith.constant 0 : index
    %c0_94 = arith.constant 0 : index
    %c0_95 = arith.constant 0 : index
    %52 = vector.load %arg6[%c0_93, %c0_94, %c0_95] : memref<1x64x32xf32, #tpu.memory_space<vmem>>, vector<1x64x32xf32>
    tpu.vector_store %arg6[%c0_93, %c0_94, %c0_95], %51 {strides = array<i32>} : memref<1x64x32xf32, #tpu.memory_space<vmem>>, vector<1x64x32xf32>,
    return
  }
  func.func @transform_0(%arg0: i32) -> (i32, i32, i32) {
    %c0_i32 = arith.constant 0 : i32
    %c0_i32_0 = arith.constant 0 : i32
    %c0_i32_1 = arith.constant 0 : i32
    return %arg0, %c0_i32, %c0_i32_0 : i32, i32, i32
  }
  func.func @transform_1(%arg0: i32) -> (i32, i32) {
    %c0_i32 = arith.constant 0 : i32
    %c0_i32_0 = arith.constant 0 : i32
    %c0_i32_1 = arith.constant 0 : i32
    return %c0_i32, %c0_i32_0 : i32, i32
  }
  func.func @transform_2(%arg0: i32) -> (i32, i32) {
    %c0_i32 = arith.constant 0 : i32
    %c0_i32_0 = arith.constant 0 : i32
    %c0_i32_1 = arith.constant 0 : i32
    return %c0_i32, %c0_i32_0 : i32, i32
  }
  func.func @transform_3(%arg0: i32) -> (i32, i32) {
    %c0_i32 = arith.constant 0 : i32
    %c0_i32_0 = arith.constant 0 : i32
    %c0_i32_1 = arith.constant 0 : i32
    return %c0_i32, %c0_i32_0 : i32, i32
  }
  func.func @transform_4(%arg0: i32) -> (i32, i32) {
    %c0_i32 = arith.constant 0 : i32
    %c0_i32_0 = arith.constant 0 : i32
    %c0_i32_1 = arith.constant 0 : i32
    return %c0_i32, %c0_i32_0 : i32, i32
  }
  func.func @transform_5(%arg0: i32) -> (i32, i32, i32) {
    %c0_i32 = arith.constant 0 : i32
    %c0_i32_0 = arith.constant 0 : i32
    %c0_i32_1 = arith.constant 0 : i32
    return %arg0, %c0_i32, %c0_i32_0 : i32, i32, i32
  }
}

module attributes {stable_mosaic.version = 11 : i64} {
  func.func @kernel(%arg0: i32, %arg1: memref<1x64x32xf32, #tpu.memory_space<vmem>>, %arg2: memref<32x32xf32, #tpu.memory_space<vmem>>, %arg3: memref<288x32xf32, #tpu.memory_space<vmem>>, %arg4: memref<1x32xf32, #tpu.memory_space<vmem>>, %arg5: memref<1x32xf32, #tpu.memory_space<vmem>>, %arg6: memref<1x64x32xf32, #tpu.memory_space<vmem>>, %arg7: memref<1x8x8x288xf32, #tpu.memory_space<vmem>>) attributes {dimension_semantics = [#tpu.dimension_semantics<parallel>], iteration_bounds = array<i64: 2>, scalar_prefetch = 0 : i64, scratch_operands = 1 : i64, tpu.core_type = #tpu.core_type<tc>, window_params = [{transform_indices = @transform_0, window_bounds = array<i64: 1, 64, 32>}, {pipeline_mode = #tpu.pipeline_mode<synchronous>, transform_indices = @transform_1, window_bounds = array<i64: 32, 32>}, {pipeline_mode = #tpu.pipeline_mode<synchronous>, transform_indices = @transform_2, window_bounds = array<i64: 288, 32>}, {pipeline_mode = #tpu.pipeline_mode<synchronous>, transform_indices = @transform_3, window_bounds = array<i64: 1, 32>}, {pipeline_mode = #tpu.pipeline_mode<synchronous>, transform_indices = @transform_4, window_bounds = array<i64: 1, 32>}, {transform_indices = @transform_5, window_bounds = array<i64: 1, 64, 32>}]} {
    %c0 = arith.constant 0 : index
    %c0_0 = arith.constant 0 : index
    %c0_1 = arith.constant 0 : index
    %0 = vector.load %arg1[%c0, %c0_0, %c0_1] : memref<1x64x32xf32, #tpu.memory_space<vmem>>, vector<1x64x32xf32>
    %1 = vector.shape_cast %0 : vector<1x64x32xf32> to vector<64x32xf32>
    %c0_2 = arith.constant 0 : index
    %c0_3 = arith.constant 0 : index
    %2 = vector.load %arg2[%c0_2, %c0_3] : memref<32x32xf32, #tpu.memory_space<vmem>>, vector<32x32xf32>
    %cst = arith.constant dense<0.000000e+00> : vector<64x32xf32>
    %3 = tpu.matmul %1, %2, %cst {dimension_numbers = #tpu.dot_dimension_numbers<[1], [0], [0], [1], [0, 0, 1, 1], [], []>} : vector<64x32xf32>, vector<32x32xf32>, vector<64x32xf32> -> vector<64x32xf32>
    %c0_4 = arith.constant 0 : index
    %c0_5 = arith.constant 0 : index
    %4 = vector.load %arg4[%c0_4, %c0_5] : memref<1x32xf32, #tpu.memory_space<vmem>>, vector<1x32xf32>
    %5 = vector.broadcast %4 : vector<1x32xf32> to vector<64x32xf32>
    %6 = arith.addf %3, %5 : vector<64x32xf32>
    %cst_6 = arith.constant 0.000000e+00 : f32
    %7 = vector.broadcast %cst_6 : f32 to vector<64x32xf32>
    %8 = arith.maximumf %6, %7 : vector<64x32xf32>
    %9 = vector.shape_cast %8 : vector<64x32xf32> to vector<1x8x8x32xf32>
    %cst_7 = arith.constant 0.000000e+00 : f32
    %10 = vector.broadcast %cst_7 : f32 to vector<1x1x8x32xf32>
    %cst_8 = arith.constant 0.000000e+00 : f32
    %11 = vector.broadcast %cst_8 : f32 to vector<1x8x1x32xf32>
    %12 = vector.extract_strided_slice %9 {offsets = [0, 0, 0, 0], sizes = [1, 7, 7, 32], strides = [1, 1, 1, 1]} : vector<1x8x8x32xf32> to vector<1x7x7x32xf32>
    %c0_9 = arith.constant 0 : index
    %c1 = arith.constant 1 : index
    %c1_10 = arith.constant 1 : index
    %c0_11 = arith.constant 0 : index
    %13 = vector.load %arg7[%c0_9, %c1, %c1_10, %c0_11] : memref<1x8x8x288xf32, #tpu.memory_space<vmem>>, vector<1x7x7x32xf32>
    tpu.vector_store %arg7[%c0_9, %c1, %c1_10, %c0_11], %12 {strides = array<i32>} : memref<1x8x8x288xf32, #tpu.memory_space<vmem>>, vector<1x7x7x32xf32>,
    %c0_12 = arith.constant 0 : index
    %c0_13 = arith.constant 0 : index
    %c0_14 = arith.constant 0 : index
    %c0_15 = arith.constant 0 : index
    %14 = vector.load %arg7[%c0_12, %c0_13, %c0_14, %c0_15] : memref<1x8x8x288xf32, #tpu.memory_space<vmem>>, vector<1x1x8x32xf32>
    tpu.vector_store %arg7[%c0_12, %c0_13, %c0_14, %c0_15], %10 {strides = array<i32>} : memref<1x8x8x288xf32, #tpu.memory_space<vmem>>, vector<1x1x8x32xf32>,
    %c0_16 = arith.constant 0 : index
    %c0_17 = arith.constant 0 : index
    %c0_18 = arith.constant 0 : index
    %c0_19 = arith.constant 0 : index
    %15 = vector.load %arg7[%c0_16, %c0_17, %c0_18, %c0_19] : memref<1x8x8x288xf32, #tpu.memory_space<vmem>>, vector<1x8x1x32xf32>
    tpu.vector_store %arg7[%c0_16, %c0_17, %c0_18, %c0_19], %11 {strides = array<i32>} : memref<1x8x8x288xf32, #tpu.memory_space<vmem>>, vector<1x8x1x32xf32>,
    %16 = vector.extract_strided_slice %9 {offsets = [0, 0, 0, 0], sizes = [1, 7, 8, 32], strides = [1, 1, 1, 1]} : vector<1x8x8x32xf32> to vector<1x7x8x32xf32>
    %c0_20 = arith.constant 0 : index
    %c1_21 = arith.constant 1 : index
    %c0_22 = arith.constant 0 : index
    %c32 = arith.constant 32 : index
    %17 = vector.load %arg7[%c0_20, %c1_21, %c0_22, %c32] : memref<1x8x8x288xf32, #tpu.memory_space<vmem>>, vector<1x7x8x32xf32>
    tpu.vector_store %arg7[%c0_20, %c1_21, %c0_22, %c32], %16 {strides = array<i32>} : memref<1x8x8x288xf32, #tpu.memory_space<vmem>>, vector<1x7x8x32xf32>,
    %c0_23 = arith.constant 0 : index
    %c0_24 = arith.constant 0 : index
    %c0_25 = arith.constant 0 : index
    %c32_26 = arith.constant 32 : index
    %18 = vector.load %arg7[%c0_23, %c0_24, %c0_25, %c32_26] : memref<1x8x8x288xf32, #tpu.memory_space<vmem>>, vector<1x1x8x32xf32>
    tpu.vector_store %arg7[%c0_23, %c0_24, %c0_25, %c32_26], %10 {strides = array<i32>} : memref<1x8x8x288xf32, #tpu.memory_space<vmem>>, vector<1x1x8x32xf32>,
    %19 = vector.extract_strided_slice %9 {offsets = [0, 0, 1, 0], sizes = [1, 7, 7, 32], strides = [1, 1, 1, 1]} : vector<1x8x8x32xf32> to vector<1x7x7x32xf32>
    %c0_27 = arith.constant 0 : index
    %c1_28 = arith.constant 1 : index
    %c0_29 = arith.constant 0 : index
    %c64 = arith.constant 64 : index
    %20 = vector.load %arg7[%c0_27, %c1_28, %c0_29, %c64] : memref<1x8x8x288xf32, #tpu.memory_space<vmem>>, vector<1x7x7x32xf32>
    tpu.vector_store %arg7[%c0_27, %c1_28, %c0_29, %c64], %19 {strides = array<i32>} : memref<1x8x8x288xf32, #tpu.memory_space<vmem>>, vector<1x7x7x32xf32>,
    %c0_30 = arith.constant 0 : index
    %c0_31 = arith.constant 0 : index
    %c0_32 = arith.constant 0 : index
    %c64_33 = arith.constant 64 : index
    %21 = vector.load %arg7[%c0_30, %c0_31, %c0_32, %c64_33] : memref<1x8x8x288xf32, #tpu.memory_space<vmem>>, vector<1x1x8x32xf32>
    tpu.vector_store %arg7[%c0_30, %c0_31, %c0_32, %c64_33], %10 {strides = array<i32>} : memref<1x8x8x288xf32, #tpu.memory_space<vmem>>, vector<1x1x8x32xf32>,
    %c0_34 = arith.constant 0 : index
    %c0_35 = arith.constant 0 : index
    %c7 = arith.constant 7 : index
    %c64_36 = arith.constant 64 : index
    %22 = vector.load %arg7[%c0_34, %c0_35, %c7, %c64_36] : memref<1x8x8x288xf32, #tpu.memory_space<vmem>>, vector<1x8x1x32xf32>
    tpu.vector_store %arg7[%c0_34, %c0_35, %c7, %c64_36], %11 {strides = array<i32>} : memref<1x8x8x288xf32, #tpu.memory_space<vmem>>, vector<1x8x1x32xf32>,
    %23 = vector.extract_strided_slice %9 {offsets = [0, 0, 0, 0], sizes = [1, 8, 7, 32], strides = [1, 1, 1, 1]} : vector<1x8x8x32xf32> to vector<1x8x7x32xf32>
    %c0_37 = arith.constant 0 : index
    %c0_38 = arith.constant 0 : index
    %c1_39 = arith.constant 1 : index
    %c96 = arith.constant 96 : index
    %24 = vector.load %arg7[%c0_37, %c0_38, %c1_39, %c96] : memref<1x8x8x288xf32, #tpu.memory_space<vmem>>, vector<1x8x7x32xf32>
    tpu.vector_store %arg7[%c0_37, %c0_38, %c1_39, %c96], %23 {strides = array<i32>} : memref<1x8x8x288xf32, #tpu.memory_space<vmem>>, vector<1x8x7x32xf32>,
    %c0_40 = arith.constant 0 : index
    %c0_41 = arith.constant 0 : index
    %c0_42 = arith.constant 0 : index
    %c96_43 = arith.constant 96 : index
    %25 = vector.load %arg7[%c0_40, %c0_41, %c0_42, %c96_43] : memref<1x8x8x288xf32, #tpu.memory_space<vmem>>, vector<1x8x1x32xf32>
    tpu.vector_store %arg7[%c0_40, %c0_41, %c0_42, %c96_43], %11 {strides = array<i32>} : memref<1x8x8x288xf32, #tpu.memory_space<vmem>>, vector<1x8x1x32xf32>,
    %c0_44 = arith.constant 0 : index
    %c0_45 = arith.constant 0 : index
    %c0_46 = arith.constant 0 : index
    %c128 = arith.constant 128 : index
    %26 = vector.load %arg7[%c0_44, %c0_45, %c0_46, %c128] : memref<1x8x8x288xf32, #tpu.memory_space<vmem>>, vector<1x8x8x32xf32>
    tpu.vector_store %arg7[%c0_44, %c0_45, %c0_46, %c128], %9 {strides = array<i32>} : memref<1x8x8x288xf32, #tpu.memory_space<vmem>>, vector<1x8x8x32xf32>,
    %27 = vector.extract_strided_slice %9 {offsets = [0, 0, 1, 0], sizes = [1, 8, 7, 32], strides = [1, 1, 1, 1]} : vector<1x8x8x32xf32> to vector<1x8x7x32xf32>
    %c0_47 = arith.constant 0 : index
    %c0_48 = arith.constant 0 : index
    %c0_49 = arith.constant 0 : index
    %c160 = arith.constant 160 : index
    %28 = vector.load %arg7[%c0_47, %c0_48, %c0_49, %c160] : memref<1x8x8x288xf32, #tpu.memory_space<vmem>>, vector<1x8x7x32xf32>
    tpu.vector_store %arg7[%c0_47, %c0_48, %c0_49, %c160], %27 {strides = array<i32>} : memref<1x8x8x288xf32, #tpu.memory_space<vmem>>, vector<1x8x7x32xf32>,
    %c0_50 = arith.constant 0 : index
    %c0_51 = arith.constant 0 : index
    %c7_52 = arith.constant 7 : index
    %c160_53 = arith.constant 160 : index
    %29 = vector.load %arg7[%c0_50, %c0_51, %c7_52, %c160_53] : memref<1x8x8x288xf32, #tpu.memory_space<vmem>>, vector<1x8x1x32xf32>
    tpu.vector_store %arg7[%c0_50, %c0_51, %c7_52, %c160_53], %11 {strides = array<i32>} : memref<1x8x8x288xf32, #tpu.memory_space<vmem>>, vector<1x8x1x32xf32>,
    %30 = vector.extract_strided_slice %9 {offsets = [0, 1, 0, 0], sizes = [1, 7, 7, 32], strides = [1, 1, 1, 1]} : vector<1x8x8x32xf32> to vector<1x7x7x32xf32>
    %c0_54 = arith.constant 0 : index
    %c0_55 = arith.constant 0 : index
    %c1_56 = arith.constant 1 : index
    %c192 = arith.constant 192 : index
    %31 = vector.load %arg7[%c0_54, %c0_55, %c1_56, %c192] : memref<1x8x8x288xf32, #tpu.memory_space<vmem>>, vector<1x7x7x32xf32>
    tpu.vector_store %arg7[%c0_54, %c0_55, %c1_56, %c192], %30 {strides = array<i32>} : memref<1x8x8x288xf32, #tpu.memory_space<vmem>>, vector<1x7x7x32xf32>,
    %c0_57 = arith.constant 0 : index
    %c7_58 = arith.constant 7 : index
    %c0_59 = arith.constant 0 : index
    %c192_60 = arith.constant 192 : index
    %32 = vector.load %arg7[%c0_57, %c7_58, %c0_59, %c192_60] : memref<1x8x8x288xf32, #tpu.memory_space<vmem>>, vector<1x1x8x32xf32>
    tpu.vector_store %arg7[%c0_57, %c7_58, %c0_59, %c192_60], %10 {strides = array<i32>} : memref<1x8x8x288xf32, #tpu.memory_space<vmem>>, vector<1x1x8x32xf32>,
    %c0_61 = arith.constant 0 : index
    %c0_62 = arith.constant 0 : index
    %c0_63 = arith.constant 0 : index
    %c192_64 = arith.constant 192 : index
    %33 = vector.load %arg7[%c0_61, %c0_62, %c0_63, %c192_64] : memref<1x8x8x288xf32, #tpu.memory_space<vmem>>, vector<1x8x1x32xf32>
    tpu.vector_store %arg7[%c0_61, %c0_62, %c0_63, %c192_64], %11 {strides = array<i32>} : memref<1x8x8x288xf32, #tpu.memory_space<vmem>>, vector<1x8x1x32xf32>,
    %34 = vector.extract_strided_slice %9 {offsets = [0, 1, 0, 0], sizes = [1, 7, 8, 32], strides = [1, 1, 1, 1]} : vector<1x8x8x32xf32> to vector<1x7x8x32xf32>
    %c0_65 = arith.constant 0 : index
    %c0_66 = arith.constant 0 : index
    %c0_67 = arith.constant 0 : index
    %c224 = arith.constant 224 : index
    %35 = vector.load %arg7[%c0_65, %c0_66, %c0_67, %c224] : memref<1x8x8x288xf32, #tpu.memory_space<vmem>>, vector<1x7x8x32xf32>
    tpu.vector_store %arg7[%c0_65, %c0_66, %c0_67, %c224], %34 {strides = array<i32>} : memref<1x8x8x288xf32, #tpu.memory_space<vmem>>, vector<1x7x8x32xf32>,
    %c0_68 = arith.constant 0 : index
    %c7_69 = arith.constant 7 : index
    %c0_70 = arith.constant 0 : index
    %c224_71 = arith.constant 224 : index
    %36 = vector.load %arg7[%c0_68, %c7_69, %c0_70, %c224_71] : memref<1x8x8x288xf32, #tpu.memory_space<vmem>>, vector<1x1x8x32xf32>
    tpu.vector_store %arg7[%c0_68, %c7_69, %c0_70, %c224_71], %10 {strides = array<i32>} : memref<1x8x8x288xf32, #tpu.memory_space<vmem>>, vector<1x1x8x32xf32>,
    %37 = vector.extract_strided_slice %9 {offsets = [0, 1, 1, 0], sizes = [1, 7, 7, 32], strides = [1, 1, 1, 1]} : vector<1x8x8x32xf32> to vector<1x7x7x32xf32>
    %c0_72 = arith.constant 0 : index
    %c0_73 = arith.constant 0 : index
    %c0_74 = arith.constant 0 : index
    %c256 = arith.constant 256 : index
    %38 = vector.load %arg7[%c0_72, %c0_73, %c0_74, %c256] : memref<1x8x8x288xf32, #tpu.memory_space<vmem>>, vector<1x7x7x32xf32>
    tpu.vector_store %arg7[%c0_72, %c0_73, %c0_74, %c256], %37 {strides = array<i32>} : memref<1x8x8x288xf32, #tpu.memory_space<vmem>>, vector<1x7x7x32xf32>,
    %c0_75 = arith.constant 0 : index
    %c7_76 = arith.constant 7 : index
    %c0_77 = arith.constant 0 : index
    %c256_78 = arith.constant 256 : index
    %39 = vector.load %arg7[%c0_75, %c7_76, %c0_77, %c256_78] : memref<1x8x8x288xf32, #tpu.memory_space<vmem>>, vector<1x1x8x32xf32>
    tpu.vector_store %arg7[%c0_75, %c7_76, %c0_77, %c256_78], %10 {strides = array<i32>} : memref<1x8x8x288xf32, #tpu.memory_space<vmem>>, vector<1x1x8x32xf32>,
    %c0_79 = arith.constant 0 : index
    %c0_80 = arith.constant 0 : index
    %c7_81 = arith.constant 7 : index
    %c256_82 = arith.constant 256 : index
    %40 = vector.load %arg7[%c0_79, %c0_80, %c7_81, %c256_82] : memref<1x8x8x288xf32, #tpu.memory_space<vmem>>, vector<1x8x1x32xf32>
    tpu.vector_store %arg7[%c0_79, %c0_80, %c7_81, %c256_82], %11 {strides = array<i32>} : memref<1x8x8x288xf32, #tpu.memory_space<vmem>>, vector<1x8x1x32xf32>,
    %c0_83 = arith.constant 0 : index
    %c0_84 = arith.constant 0 : index
    %c0_85 = arith.constant 0 : index
    %c0_86 = arith.constant 0 : index
    %41 = vector.load %arg7[%c0_83, %c0_84, %c0_85, %c0_86] : memref<1x8x8x288xf32, #tpu.memory_space<vmem>>, vector<1x8x8x288xf32>
    %42 = vector.shape_cast %41 : vector<1x8x8x288xf32> to vector<64x288xf32>
    %c0_87 = arith.constant 0 : index
    %c0_88 = arith.constant 0 : index
    %43 = vector.load %arg3[%c0_87, %c0_88] : memref<288x32xf32, #tpu.memory_space<vmem>>, vector<288x32xf32>
    %cst_89 = arith.constant dense<0.000000e+00> : vector<64x32xf32>
    %44 = tpu.matmul %42, %43, %cst_89 {dimension_numbers = #tpu.dot_dimension_numbers<[1], [0], [0], [1], [0, 0, 1, 1], [], []>} : vector<64x288xf32>, vector<288x32xf32>, vector<64x32xf32> -> vector<64x32xf32>
    %c0_90 = arith.constant 0 : index
    %c0_91 = arith.constant 0 : index
    %45 = vector.load %arg5[%c0_90, %c0_91] : memref<1x32xf32, #tpu.memory_space<vmem>>, vector<1x32xf32>
    %46 = vector.broadcast %45 : vector<1x32xf32> to vector<64x32xf32>
    %47 = arith.addf %44, %46 : vector<64x32xf32>
    %48 = arith.addf %47, %1 : vector<64x32xf32>
    %cst_92 = arith.constant 0.000000e+00 : f32
    %49 = vector.broadcast %cst_92 : f32 to vector<64x32xf32>
    %50 = arith.maximumf %48, %49 : vector<64x32xf32>
    %51 = vector.shape_cast %50 : vector<64x32xf32> to vector<1x64x32xf32>
    %c0_93 = arith.constant 0 : index
    %c0_94 = arith.constant 0 : index
    %c0_95 = arith.constant 0 : index
    %52 = vector.load %arg6[%c0_93, %c0_94, %c0_95] : memref<1x64x32xf32, #tpu.memory_space<vmem>>, vector<1x64x32xf32>
    tpu.vector_store %arg6[%c0_93, %c0_94, %c0_95], %51 {strides = array<i32>} : memref<1x64x32xf32, #tpu.memory_space<vmem>>, vector<1x64x32xf32>,
    return
  }
  func.func @transform_0(%arg0: i32) -> (i32, i32, i32) {
    %c0_i32 = arith.constant 0 : i32
    %c0_i32_0 = arith.constant 0 : i32
    %c0_i32_1 = arith.constant 0 : i32
    return %arg0, %c0_i32, %c0_i32_0 : i32, i32, i32
  }
  func.func @transform_1(%arg0: i32) -> (i32, i32) {
    %c0_i32 = arith.constant 0 : i32
    %c0_i32_0 = arith.constant 0 : i32
    %c0_i32_1 = arith.constant 0 : i32
    return %c0_i32, %c0_i32_0 : i32, i32
  }
  func.func @transform_2(%arg0: i32) -> (i32, i32) {
    %c0_i32 = arith.constant 0 : i32
    %c0_i32_0 = arith.constant 0 : i32
    %c0_i32_1 = arith.constant 0 : i32
    return %c0_i32, %c0_i32_0 : i32, i32
  }
  func.func @transform_3(%arg0: i32) -> (i32, i32) {
    %c0_i32 = arith.constant 0 : i32
    %c0_i32_0 = arith.constant 0 : i32
    %c0_i32_1 = arith.constant 0 : i32
    return %c0_i32, %c0_i32_0 : i32, i32
  }
  func.func @transform_4(%arg0: i32) -> (i32, i32) {
    %c0_i32 = arith.constant 0 : i32
    %c0_i32_0 = arith.constant 0 : i32
    %c0_i32_1 = arith.constant 0 : i32
    return %c0_i32, %c0_i32_0 : i32, i32
  }
  func.func @transform_5(%arg0: i32) -> (i32, i32, i32) {
    %c0_i32 = arith.constant 0 : i32
    %c0_i32_0 = arith.constant 0 : i32
    %c0_i32_1 = arith.constant 0 : i32
    return %arg0, %c0_i32, %c0_i32_0 : i32, i32, i32
  }
}

</mosaic_0001>

<bundles_post_ra>
// kernel: tpu_custom_call.1
= control target key start
LH: loop header
LB: loop body
LE: loop exit
PB: predicated region body
PF: predicated region fallthrough
CT: control target
= control target key end

     0   :  { %s1272_s18 = smov 0   ;;  %s1828_s0 = inlined_call_operand.vmem [shape: f32[2,64,32], index: 0, kind: input, shape index: {}]   ;;  %s1829_s1 = inlined_call_operand.vmem [shape: f32[32,32], index: 1, kind: input, shape index: {}]   ;;  %s1830_s2 = inlined_call_operand.vmem [shape: f32[288,32], index: 2, kind: input, shape index: {}]   ;;  %s1831_s3 = inlined_call_operand.vmem [shape: f32[1,32], index: 3, kind: input, shape index: {}]   ;;  %s1832_s4 = inlined_call_operand.vmem [shape: f32[1,32], index: 4, kind: input, shape index: {}]   ;;  %s1833_s5 = inlined_call_operand.vmem [shape: f32[2,64,32], index: 5, kind: output, shape index: {}]  }
   0x1 LB: > { %s1067_s19 = sadd.s32 4294967295, %s1236_s18   ;;  %p1071_p0 = scmp.ge.s32.totalorder %s1236_s18, 1  ;;  %s1236_s18 = sphi %s1272_s18, %s15_s18  }
   0x2   : > { %p187_p1 = scmp.lt.s32.totalorder %s1236_s18, 3 }
   0x4   : > { %p188_p2 = pnand %p1071_p0, %p187_p1 }
   0x5   : > { %p215_p3 = scmp.lt.s32.totalorder (!%p188_p2), %s1067_s19, 1  ;;  %s1239_s9 = smov (!%p188_p2), 96  }
   0x6   : > { %191 = sbr.rel (%p188_p2) target bundleno = 636 (0x27c), region = 40  ;;  %s1240_s14 = smov (!%p188_p2), 64  }
   0x7   : > { %s1241_s21 = smov (!%p188_p2), 32  }
   0xb   : > { %v236_v0 = vld [vmem:[%s1829_s1 + $0x18] sm:$0xff]  ;;  %v235_v1 = vld [vmem:[%s1829_s1 + $0x10] sm:$0xff]  ;;  %v234_v2 = vld [vmem:[%s1829_s1 + $0x8] sm:$0xff]  ;;  %s1835_s19 = smov (!%p215_p3, %s1067_s19), 1  ;;  %vm244_vm0 = vcmask 261120   ;;  %vm413_vm1 = vcmask 253952  }
   0xc   : > { %1178 = vmatprep.subr.mxu0 %v236_v0  ;;  %v233_v3 = vld [vmem:[%s1829_s1] sm:$0xff]  ;;  %s1096_s28 = sshll.u32 %s1835_s19, 6  ;;  %v1238_v12 = vmov 0.0   ;;  %v746_v13 = vld [vmem:[%s1830_s2 + $0x118] sm:$0xff]  ;;  %v745_v14 = vld [vmem:[%s1830_s2 + $0x110] sm:$0xff]  ;;  %vm443_vm2 = vcmask 523520  }
   0xd   : > { %1179 = vmatpush3.msra.mxu0 %v236_v0  ;;  %s219_s6 = scalar_lea.vmem %s1828_s0, %s1096_s28  ;;  %679 = vst.msk [vmem:[#allocation2 + $0x17] sm:$0x1] %vm413_vm1, %v1238_v12  ;;  %415 = vst.msk [vmem:[#allocation2 + $0x18] sm:$0x1] %vm413_vm1, %v1238_v12  ;;  %v744_v15 = vld [vmem:[%s1830_s2 + $0x108] sm:$0xff]  ;;  %v743_v16 = vld [vmem:[%s1830_s2 + $0x100] sm:$0xff]  ;;  %s1793_s24 = scalar_lea.vmem %s1833_s5, %s1096_s28 }
   0xe   : > { %1180 = vmatprep.subr.mxu0 %v235_v1  ;;  %v1300_v4 = vld [vmem:[%s219_s6] sm:$0xff]  ;;  %v1302_v5 = vld [vmem:[%s219_s6 + $0x8] sm:$0xff]  ;;  %v1306_v6 = vld [vmem:[%s219_s6 + $0x10] sm:$0xff]  ;;  %412 = vst.msk [vmem:[#allocation2] sm:$0xff] %vm244_vm0, %v1238_v12  ;;  %vm670_vm3 = vcmask 260096   ;;  %vm404_vm4 = vcmask 261121  }
   0xf   : > { %1181 = vmatpush3.msra.mxu0 %v235_v1  ;;  %1186 = vmatprep.mubr.msk.f32.mxu0 %vm244_vm0, %v1300_v4  ;;  %v1312_v7 = vld [vmem:[%s219_s6 + $0x18] sm:$0xff]  ;;  %v1314_v8 = vld [vmem:[%s219_s6 + $0x20] sm:$0xff]  ;;  %v1320_v9 = vld [vmem:[%s219_s6 + $0x28] sm:$0xff]  ;;  %416 = vst.msk [vmem:[#allocation2 + $0x30] sm:$0x1] %vm413_vm1, %v1238_v12  ;;  %vm585_vm5 = vcmask 516352  }
  0x10   : > { %1182 = vmatprep.subr.mxu0 %v234_v2  ;;  %v1322_v10 = vld [vmem:[%s219_s6 + $0x30] sm:$0xff]  ;;  %v1328_v11 = vld [vmem:[%s219_s6 + $0x38] sm:$0xff]  ;;  %417 = vst.msk [vmem:[#allocation2 + $0x48] sm:$0x1] %vm413_vm1, %v1238_v12  ;;  %418 = vst.msk [vmem:[#allocation2 + $0x60] sm:$0x1] %vm413_vm1, %v1238_v12 }
  0x11   : > { %1183 = vmatpush3.msra.mxu0 %v234_v2  ;;  %419 = vst.msk [vmem:[#allocation2 + $0x78] sm:$0x1] %vm413_vm1, %v1238_v12  ;;  %420 = vst.msk [vmem:[#allocation2 + $0x90] sm:$0x1] %vm413_vm1, %v1238_v12  ;;  %v742_v17 = vld [vmem:[%s1830_s2 + $0xf8] sm:$0xff]  ;;  %v741_v19 = vld [vmem:[%s1830_s2 + $0xf0] sm:$0xff] }
  0x12   : > { %1184 = vmatprep.subr.mxu0 %v233_v3  ;;  %421 = vst.msk [vmem:[#allocation2 + $0xa8] sm:$0x1] %vm413_vm1, %v1238_v12  ;;  %680 = vst.msk [vmem:[#allocation2 + $0x2f] sm:$0x1] %vm413_vm1, %v1238_v12  ;;  %v726_v18 = vld [vmem:[%s1830_s2 + $0x78] sm:$0xff]  ;;  %1110 = vmatprep.subr.mxu1 %v742_v17  ;;  %v725_v20 = vld [vmem:[%s1830_s2 + $0x70] sm:$0xff] }
  0x13   : > { %1185 = vmatpush3.msra.mxu0 %v233_v3  ;;  %678 = vst.msk [vmem:[#allocation2 + $0xb8] sm:$0xff] %vm244_vm0, %v1238_v12  ;;  %1111 = vmatpush3.msra.mxu1 %v726_v18  ;;  %v740_v21 = vld [vmem:[%s1830_s2 + $0xe8] sm:$0xff]  ;;  %v739_v23 = vld [vmem:[%s1830_s2 + $0xe0] sm:$0xff]  ;;  %v738_v25 = vld [vmem:[%s1830_s2 + $0xd8] sm:$0xff]  ;;  %vm534_vm6 = vcmask 1041152   ;;  %vm490_vm7 = vcmask 778752  }
  0x14   : > { %1187 = vmatmul.mubr.msk.f32.vlgmr.msra.gmra.mxu0 %vm244_vm0, %v1302_v5  ;;  %681 = vst.msk [vmem:[#allocation2 + $0x47] sm:$0x1] %vm413_vm1, %v1238_v12  ;;  %682 = vst.msk [vmem:[#allocation2 + $0x5f] sm:$0x1] %vm413_vm1, %v1238_v12  ;;  %1198 = vmatprep.subr.mxu0 %v746_v13  ;;  %v724_v22 = vld [vmem:[%s1830_s2 + $0x68] sm:$0xff]  ;;  %v723_v24 = vld [vmem:[%s1830_s2 + $0x60] sm:$0xff] }
  0x15   : > { %1189 = vmatprep.mubr.msk.f32.mxu0 %vm244_vm0, %v1306_v6  ;;  %683 = vst.msk [vmem:[#allocation2 + $0x77] sm:$0x1] %vm413_vm1, %v1238_v12  ;;  %684 = vst.msk [vmem:[#allocation2 + $0x8f] sm:$0x1] %vm413_vm1, %v1238_v12  ;;  %1199 = vmatpush3.msra.mxu0 %v746_v13  ;;  %v722_v26 = vld [vmem:[%s1830_s2 + $0x58] sm:$0xff]  ;;  %v737_v27 = vld [vmem:[%s1830_s2 + $0xd0] sm:$0xff] }
  0x16   : > { %685 = vst.msk [vmem:[#allocation2 + $0xa7] sm:$0x1] %vm413_vm1, %v1238_v12  ;;  %414 = vst.msk [vmem:[#allocation2] sm:$0x1] %vm413_vm1, %v1238_v12  ;;  %1200 = vmatprep.subr.mxu0 %v745_v14  ;;  %1112 = vmatprep.subr.mxu1 %v741_v19  ;;  %v1418_v28 = vld [vmem:[%s1831_s3] ss:$0 sm:$0xff] }
  0x17   : > { %686 = vst.msk [vmem:[#allocation2 + $0xbf] sm:$0x1] %vm413_vm1, %v1238_v12  ;;  %1201 = vmatpush3.msra.mxu0 %v745_v14  ;;  %1113 = vmatpush3.msra.mxu1 %v725_v20  ;;  %v721_v29 = vld [vmem:[%s1830_s2 + $0x50] sm:$0xff]  ;;  %v736_v30 = vld [vmem:[%s1830_s2 + $0xc8] sm:$0xff]  ;;  %v735_v34 = vld [vmem:[%s1830_s2 + $0xc0] sm:$0xff]  ;;  %vm488_vm8 = vcmask 785920  }
  0x18   : > { %1190 = vmatmul.mubr.msk.f32.gmra.mxu0 %vm244_vm0, %v1312_v7  ;;  %1202 = vmatprep.subr.mxu0 %v744_v15  ;;  %451 = vst.msk [vmem:[#allocation2] sm:$0xff] %vm443_vm2, %v1238_v12  ;;  %v720_v32 = vld [vmem:[%s1830_s2 + $0x48] sm:$0xff]  ;;  %v719_v36 = vld [vmem:[%s1830_s2 + $0x40] sm:$0xff]  ;;  %v734_v39 = vld [vmem:[%s1830_s2 + $0xb8] sm:$0xff]  ;;  %vm576_vm9 = vcmask 522496   ;;  %vm615_vm10 = vcmask 785921  }
  0x19   : > { %1192 = vmatprep.mubr.msk.f32.mxu0 %vm244_vm0, %v1314_v8  ;;  %1203 = vmatpush3.msra.mxu0 %v744_v15  ;;  %v718_v41 = vld [vmem:[%s1830_s2 + $0x38] sm:$0xff]  ;;  %v733_v46 = vld [vmem:[%s1830_s2 + $0xb0] sm:$0xff]  ;;  %v732_v52 = vld [vmem:[%s1830_s2 + $0xa8] sm:$0xff]  ;;  %489 = vst.msk [vmem:[#allocation2] sm:$0xff] %vm488_vm8, %v1238_v12  ;;  %vm654_vm11 = vcmask 1048320   ;;  %vm480_vm12 = vcmask 784896  }
  0x1a   : > { %1204 = vmatprep.subr.mxu0 %v743_v16  ;;  %1114 = vmatprep.subr.mxu1 %v740_v21  ;;  %v717_v47 = vld [vmem:[%s1830_s2 + $0x30] sm:$0xff]  ;;  %v716_v54 = vld [vmem:[%s1830_s2 + $0x28] sm:$0xff]  ;;  %v731_v59 = vld [vmem:[%s1830_s2 + $0xa0] sm:$0xff]  ;;  %491 = vst.msk [vmem:[#allocation2 + $0x7] sm:$0x1] %vm490_vm7, %v1238_v12  ;;  %vm525_vm13 = vcmask 1048321  }
  0x1b   : > { %1205 = vmatpush3.msra.mxu0 %v743_v16  ;;  %1115 = vmatpush3.msra.mxu1 %v724_v22  ;;  %v715_v60 = vld [vmem:[%s1830_s2 + $0x20] sm:$0xff]  ;;  %v730_v2 = vld [vmem:[%s1830_s2 + $0x98] sm:$0xff]  ;;  %535 = vst.msk [vmem:[#allocation2] sm:$0x1] %vm534_vm6, %v1238_v12  ;;  %v729_v19 = vld [vmem:[%s1830_s2 + $0x90] sm:$0xff] }
  0x1c   : > { %1193 = vmatmul.mubr.msk.f32.gmra.mxu0 %vm244_vm0, %v1320_v9  ;;  %1116 = vmatprep.subr.mxu1 %v739_v23  ;;  %v714_v14 = vld [vmem:[%s1830_s2 + $0x18] sm:$0xff]  ;;  %v713_v20 = vld [vmem:[%s1830_s2 + $0x10] sm:$0xff] }
  0x1d   : > { %1195 = vmatprep.mubr.msk.f32.mxu0 %vm244_vm0, %v1322_v10  ;;  %1117 = vmatpush3.msra.mxu1 %v723_v24 }
  0x1e   : > { %1118 = vmatprep.subr.mxu1 %v738_v25 }
  0x1f   : > { %1119 = vmatpush3.msra.mxu1 %v722_v26 }
  0x20   : > { %1196 = vmatmul.mubr.msk.f32.gmra.mxu0 %vm244_vm0, %v1328_v11  ;;  %1120 = vmatprep.subr.mxu1 %v737_v27  ;;  %v728_v27 = vld [vmem:[%s1830_s2 + $0x88] sm:$0xff] }
  0x21   : > { %1121 = vmatpush3.msra.mxu1 %v721_v29  ;;  %v712_v29 = vld [vmem:[%s1830_s2 + $0x8] sm:$0xff] }
  0x22   : > { %1122 = vmatprep.subr.mxu1 %v736_v30 }
  0x23   : > { %1123 = vmatpush3.msra.mxu1 %v720_v32  ;;  %v711_v32 = vld [vmem:[%s1830_s2] sm:$0xff] }
  0x24   : > { %1124 = vmatprep.subr.mxu1 %v735_v34 }
  0x25   : > { %1125 = vmatpush3.msra.mxu1 %v719_v36 }
  0x26   : > { %1126 = vmatprep.subr.mxu1 %v734_v39 }
  0x27   : > { %1127 = vmatpush3.msra.mxu1 %v718_v41 }
  0x28   : > { %1128 = vmatprep.subr.mxu1 %v733_v46 }
  0x29   : > { %1129 = vmatpush3.msra.mxu1 %v717_v47 }
  0x2a   : > { %1130 = vmatprep.subr.mxu1 %v732_v52 }
  0x2b   : > { %1131 = vmatpush3.msra.mxu1 %v716_v54 }
  0x2c   : > { %1132 = vmatprep.subr.mxu1 %v731_v59 }
  0x2d   : > { %1133 = vmatpush3.msra.mxu1 %v715_v60 }
  0x2e   : > { %1134 = vmatprep.subr.mxu1 %v730_v2 }
  0x2f   : > { %1135 = vmatpush3.msra.mxu1 %v714_v14 }
  0x30   : > { %1136 = vmatprep.subr.mxu1 %v729_v19 }
  0x31   : > { %1137 = vmatpush3.msra.mxu1 %v713_v20 }
  0x32   : > { %1138 = vmatprep.subr.mxu1 %v728_v27 }
  0x33   : > { %1139 = vmatpush3.msra.mxu1 %v712_v29 }
  0xd4   : > { %v1188_v31 = vpop.f32.mrf.mxu0 }
  0xd5   : > { %v341_v33 = vadd.f32 %v1188_v31, %v1418_v28  ;;  %v727_v31 = vld [vmem:[%s1830_s2 + $0x80] sm:$0xff] }
  0xd6   : > { %v335_v35 = vpop.f32.mrf.mxu0  ;;  %1140 = vmatprep.subr.mxu1 %v727_v31 }
  0xd7   : > { %v375_v37 = vmax.f32 %v341_v33, 0.0  ;;  %v336_v38 = vadd.f32 %v1418_v28, %v335_v35  ;;  %1141 = vmatpush3.msra.mxu1 %v711_v32 }
  0xd8   : > { %v1191_v40 = vpop.f32.mrf.mxu0 }
  0xd9   : > { %544 = vst.msk [vmem:[#allocation2 + $0x20] sm:$0xff] %vm244_vm0, %v375_v37  ;;  %v1444_v42 = vmax.f32 %v336_v38, 0.0  ;;  %633 = vrot.lane.b32.xlu1 %v375_v37, %s1239_s9  ;;  %v1447_v43 = vrot.slane %v375_v37, 7  ;;  %v351_v44 = vadd.f32 %v1191_v40, %v1418_v28  ;;  %v1450_v45 = vrot.slane %v375_v37, 1 }
  0xda   : > { %v345_v48 = vpop.f32.mrf.mxu0  ;;  %587 = vst.msk [vmem:[#allocation2 + $0x27] sm:$0x1] %vm585_vm5, %v1238_v12 }
  0xdb   : > { %543 = vst.msk [vmem:[#allocation2 + $0x8] sm:$0xff] %vm244_vm0, %v1444_v42  ;;  %594 = vrot.lane.b32.xlu0 %v1447_v43, %s1240_s14  ;;  %v1464_v49 = vmax.f32 %v351_v44, 0.0  ;;  %v346_v50 = vadd.f32 %v1418_v28, %v345_v48  ;;  %v389_v51 = vrot.slane %v1444_v42, 7  ;;  %v452_v3 = vrot.slane %v1444_v42, 1 }
  0xdc   : > { %671 = vst.msk [vmem:[#allocation2 + $0x10] sm:$0x7f] %vm670_vm3, %v1450_v45  ;;  %v1194_v53 = vpop.f32.mrf.mxu0 }
  0xdd   : > { %406 = vst.msk [vmem:[#allocation2 + $0x30] sm:$0xfe] %vm404_vm4, %v1447_v43  ;;  %424 = vrot.lane.b32.xlu1 %v375_v37, %s1241_s21  ;;  %v1482_v55 = vrot.slane %v1464_v49, 1  ;;  %v1486_v56 = vmax.f32 %v346_v50, 0.0  ;;  %405 = vst.msk [vmem:[#allocation2 + $0x18] sm:$0xfe] %vm404_vm4, %v389_v51  ;;  %v361_v58 = vadd.f32 %v1194_v53, %v1418_v28 }
  0xde   : > { %586 = vst.msk [vmem:[#allocation2 + $0xf] sm:$0x1] %vm585_vm5, %v1238_v12  ;;  %v1492_v57 = vrot.slane %v1464_v49, 7  ;;  %v355_v61 = vpop.f32.mrf.mxu0 }
  0xdf   : > { %546 = vst.msk [vmem:[#allocation2 + $0x50] sm:$0xff] %vm244_vm0, %v1464_v49  ;;  %554 = vrot.lane.b32.xlu0 %v1450_v45, %s1241_s21  ;;  %v1508_v62 = vrot.slane %v1486_v56, 1  ;;  %545 = vst.msk [vmem:[#allocation2 + $0x38] sm:$0xff] %vm244_vm0, %v1486_v56  ;;  %v1514_v63 = vmax.f32 %v361_v58, 0.0  ;;  %v1517_v0 = vrot.slane %v1486_v56, 7  ;;  %v356_v1 = vadd.f32 %v1418_v28, %v355_v61 }
  0xe0   : > { %589 = vst.msk [vmem:[#allocation2 + $0x57] sm:$0x1] %vm585_vm5, %v1238_v12  ;;  %v1197_v13 = vpop.f32.mrf.mxu0  ;;  %588 = vst.msk [vmem:[#allocation2 + $0x3f] sm:$0x1] %vm585_vm5, %v1238_v12 }
  0xe1   : > { %673 = vst.msk [vmem:[#allocation2 + $0x40] sm:$0x7f] %vm670_vm3, %v1482_v55  ;;  %672 = vst.msk [vmem:[#allocation2 + $0x28] sm:$0x7f] %vm670_vm3, %v1508_v62  ;;  %422 = vrot.lane.b32.xlu1 %v1444_v42, %s1241_s21  ;;  %v1540_v15 = vrot.slane %v1514_v63, 1  ;;  %v1546_v16 = vmax.f32 %v356_v1, 0.0  ;;  %v371_v18 = vadd.f32 %v1197_v13, %v1418_v28 }
  0xe2   : > { %408 = vst.msk [vmem:[#allocation2 + $0x60] sm:$0xfe] %vm404_vm4, %v1492_v57  ;;  %407 = vst.msk [vmem:[#allocation2 + $0x48] sm:$0xfe] %vm404_vm4, %v1517_v0  ;;  %v1549_v17 = vrot.slane %v1514_v63, 7  ;;  %v365_v22 = vpop.f32.mrf.mxu0  ;;  %v710_v42 = vld [vmem:[#allocation2 + $0xb8] sm:$0xff] }
  0xe3   : > { %548 = vst.msk [vmem:[#allocation2 + $0x80] sm:$0xff] %vm244_vm0, %v1514_v63  ;;  %v689_v21 = vld [vmem:[#allocation2 + $0x10] sm:$0xff]  ;;  %552 = vrot.lane.b32.xlu0 %v452_v3, %s1241_s21  ;;  %v1567_v23 = vrot.slane %v1546_v16, 1  ;;  %547 = vst.msk [vmem:[#allocation2 + $0x68] sm:$0xff] %vm244_vm0, %v1546_v16  ;;  %v1573_v24 = vmax.f32 %v371_v18, 0.0  ;;  %v1576_v25 = vrot.slane %v1546_v16, 7  ;;  %v366_v26 = vadd.f32 %v1418_v28, %v365_v22 }
  0xe4   : > { %591 = vst.msk [vmem:[#allocation2 + $0x87] sm:$0x1] %vm585_vm5, %v1238_v12  ;;  %1206 = vmatprep.mubr.msk.f32.mxu0 %vm244_vm0, %v689_v21  ;;  %590 = vst.msk [vmem:[#allocation2 + $0x6f] sm:$0x1] %vm585_vm5, %v1238_v12 }
  0xe5   : > { %675 = vst.msk [vmem:[#allocation2 + $0x70] sm:$0x7f] %vm670_vm3, %v1540_v15  ;;  %503 = vrot.lane.b32.xlu1 %v1447_v43, %s1239_s9  ;;  %674 = vst.msk [vmem:[#allocation2 + $0x58] sm:$0x7f] %vm670_vm3, %v1567_v23  ;;  %v551_v28 = vrot.slane %v1573_v24, 1  ;;  %v380_v30 = vmax.f32 %v366_v26, 0.0 }
  0xe6   : > { %410 = vst.msk [vmem:[#allocation2 + $0x90] sm:$0xfe] %vm404_vm4, %v1549_v17  ;;  %409 = vst.msk [vmem:[#allocation2 + $0x78] sm:$0xfe] %vm404_vm4, %v1576_v25  ;;  %v500_v41 = vrot.slane %v1573_v24, 7 }
  0xe7   : > { %550 = vst.msk [vmem:[#allocation2 + $0xb0] sm:$0xff] %vm244_vm0, %v1573_v24  ;;  %637 = vrot.lane.b32.xlu0 %v1464_v49, %s1239_s9  ;;  %v458_v34 = vrot.slane %v380_v30, 1  ;;  %549 = vst.msk [vmem:[#allocation2 + $0x98] sm:$0xff] %vm244_vm0, %v380_v30  ;;  %v395_v35 = vrot.slane %v380_v30, 7 }
  0xe8   : > { %593 = vst.msk [vmem:[#allocation2 + $0xb7] sm:$0x1] %vm585_vm5, %v1238_v12  ;;  %v695_v33 = vld [vmem:[#allocation2 + $0x40] sm:$0xff]  ;;  %v692_v36 = vld [vmem:[#allocation2 + $0x28] sm:$0xff]  ;;  %592 = vst.msk [vmem:[#allocation2 + $0x9f] sm:$0x1] %vm585_vm5, %v1238_v12 }
  0xe9   : > { %677 = vst.msk [vmem:[#allocation2 + $0xa0] sm:$0x7f] %vm670_vm3, %v551_v28  ;;  %461 = vrot.lane.b32.xlu1 %v1450_v45, %s1240_s14  ;;  %1207 = vmatmul.mubr.msk.f32.vlgmr.msra.gmra.mxu0 %vm244_vm0, %v692_v36  ;;  %676 = vst.msk [vmem:[#allocation2 + $0x88] sm:$0x7f] %vm670_vm3, %v458_v34 }
  0xea   : > { %411 = vst.msk [vmem:[#allocation2 + $0xa8] sm:$0xfe] %vm404_vm4, %v395_v35  ;;  %1209 = vmatprep.mubr.msk.f32.mxu0 %vm244_vm0, %v695_v33 }
  0xeb   : > { %635 = vrot.lane.b32.xlu0 %v1486_v56, %s1239_s9 }
  0xec   : > { %v701_v37 = vld [vmem:[#allocation2 + $0x70] sm:$0xff]  ;;  %v698_v38 = vld [vmem:[#allocation2 + $0x58] sm:$0xff] }
  0xed   : > { %501 = vrot.lane.b32.xlu1 %v389_v51, %s1239_s9  ;;  %1210 = vmatmul.mubr.msk.f32.gmra.mxu0 %vm244_vm0, %v698_v38 }
  0xee   : > { %1212 = vmatprep.mubr.msk.f32.mxu0 %vm244_vm0, %v701_v37 }
  0xef   : > { %598 = vrot.lane.b32.xlu0 %v1492_v57, %s1240_s14 }
  0xf0   : > { %v707_v39 = vld [vmem:[#allocation2 + $0xa0] sm:$0xff]  ;;  %v704_v40 = vld [vmem:[#allocation2 + $0x88] sm:$0xff] }
  0xf1   : > { %459 = vrot.lane.b32.xlu1 %v452_v3, %s1240_s14  ;;  %1213 = vmatmul.mubr.msk.f32.gmra.mxu0 %vm244_vm0, %v704_v40 }
  0xf2   : > { %1215 = vmatprep.mubr.msk.f32.mxu0 %vm244_vm0, %v707_v39 }
  0xf3   : > { %558 = vrot.lane.b32.xlu0 %v1482_v55, %s1241_s21 }
  0xf5   : > { %428 = vrot.lane.b32.xlu1 %v1464_v49, %s1241_s21  ;;  %1216 = vmatmul.mubr.msk.f32.gmra.mxu0 %vm244_vm0, %v710_v42 }
  0xf7   : > { %596 = vrot.lane.b32.xlu0 %v1517_v0, %s1240_s14 }
  0xf9   : > { %426 = vrot.lane.b32.xlu1 %v1486_v56, %s1241_s21 }
  0xfb   : > { %556 = vrot.lane.b32.xlu0 %v1508_v62, %s1241_s21 }
  0xfd   : > { %507 = vrot.lane.b32.xlu1 %v1492_v57, %s1239_s9 }
  0xff   : > { %641 = vrot.lane.b32.xlu0 %v1514_v63, %s1239_s9 }
 0x101   : > { %465 = vrot.lane.b32.xlu1 %v1482_v55, %s1240_s14 }
 0x103   : > { %639 = vrot.lane.b32.xlu0 %v1546_v16, %s1239_s9 }
 0x105   : > { %505 = vrot.lane.b32.xlu1 %v1517_v0, %s1239_s9 }
 0x107   : > { %602 = vrot.lane.b32.xlu0 %v1549_v17, %s1240_s14 }
 0x109   : > { %463 = vrot.lane.b32.xlu1 %v1508_v62, %s1240_s14 }
 0x10b   : > { %562 = vrot.lane.b32.xlu0 %v1540_v15, %s1241_s21 }
 0x10d   : > { %432 = vrot.lane.b32.xlu1 %v1514_v63, %s1241_s21 }
 0x10f   : > { %600 = vrot.lane.b32.xlu0 %v1576_v25, %s1240_s14 }
 0x111   : > { %430 = vrot.lane.b32.xlu1 %v1546_v16, %s1241_s21 }
 0x113   : > { %560 = vrot.lane.b32.xlu0 %v1567_v23, %s1241_s21 }
 0x115   : > { %511 = vrot.lane.b32.xlu1 %v1549_v17, %s1239_s9 }
 0x117   : > { %645 = vrot.lane.b32.xlu0 %v1573_v24, %s1239_s9 }
 0x119   : > { %469 = vrot.lane.b32.xlu1 %v1540_v15, %s1240_s14 }
 0x11b   : > { %643 = vrot.lane.b32.xlu0 %v380_v30, %s1239_s9 }
 0x11d   : > { %509 = vrot.lane.b32.xlu1 %v1576_v25, %s1239_s9 }
 0x11f   : > { %606 = vrot.lane.b32.xlu0 %v500_v41, %s1240_s14 }
 0x121   : > { %467 = vrot.lane.b32.xlu1 %v1567_v23, %s1240_s14 }
 0x123   : > { %604 = vrot.lane.b32.xlu0 %v395_v35, %s1240_s14 }
 0x125   : > { %434 = vrot.lane.b32.xlu1 %v380_v30, %s1241_s21 }
 0x127   : > { %564 = vrot.lane.b32.xlu0 %v458_v34, %s1241_s21 }
 0x129   : > { %513 = vrot.lane.b32.xlu1 %v395_v35, %s1239_s9 }
 0x12b   : > { %566 = vrot.lane.b32.xlu0 %v551_v28, %s1241_s21 }
 0x12d   : > { %515 = vrot.lane.b32.xlu1 %v500_v41, %s1239_s9 }
 0x12f   : > { %471 = vrot.lane.b32.xlu0 %v458_v34, %s1240_s14 }
 0x14b   : > { %v634_v43 = vpop.permute.xlu1 %633 }
 0x14d   : > { %v595_v44 = vpop.permute.xlu0 %594 }
 0x14f   : > { %v425_v45 = vpop.permute.xlu1 %424 }
 0x150   : > { %445 = vst.msk [vmem:[#allocation2 + $0x30] sm:$0xff] %vm443_vm2, %v425_v45 }
 0x151   : > { %493 = vst.msk [vmem:[#allocation2 + $0x37] sm:$0x1] %vm490_vm7, %v1238_v12  ;;  %v555_v46 = vpop.permute.xlu0 %554 }
 0x152   : > { %578 = vst.msk [vmem:[#allocation2 + $0x20] sm:$0x7f] %vm576_vm9, %v555_v46 }
 0x153   : > { %626 = vst.msk [vmem:[#allocation2 + $0x20] sm:$0x1] %vm490_vm7, %v1238_v12  ;;  %v423_v47 = vpop.permute.xlu1 %422 }
 0x154   : > { %444 = vst.msk [vmem:[#allocation2 + $0x18] sm:$0xff] %vm443_vm2, %v423_v47 }
 0x155   : > { %492 = vst.msk [vmem:[#allocation2 + $0x1f] sm:$0x1] %vm490_vm7, %v1238_v12  ;;  %v553_v48 = vpop.permute.xlu0 %552 }
 0x156   : > { %577 = vst.msk [vmem:[#allocation2 + $0x8] sm:$0x7f] %vm576_vm9, %v553_v48 }
 0x157   : > { %616 = vst.msk [vmem:[#allocation2 + $0x8] sm:$0xfe] %vm615_vm10, %v595_v44  ;;  %v504_v49 = vpop.permute.xlu1 %503 }
 0x158   : > { %625 = vst.msk [vmem:[#allocation2 + $0x8] sm:$0x1] %vm490_vm7, %v1238_v12 }
 0x159   : > { %655 = vst.msk [vmem:[#allocation2 + $0x8] sm:$0xff] %vm654_vm11, %v634_v43  ;;  %v638_v50 = vpop.permute.xlu0 %637 }
 0x15b   : > { %v462_v51 = vpop.permute.xlu1 %461 }
 0x15c   : > { %482 = vst.msk [vmem:[#allocation2 + $0x30] sm:$0x7f] %vm480_vm12, %v462_v51 }
 0x15d   : > { %537 = vst.msk [vmem:[#allocation2 + $0x30] sm:$0x1] %vm534_vm6, %v1238_v12  ;;  %v636_v52 = vpop.permute.xlu0 %635 }
 0x15f   : > { %v502_v53 = vpop.permute.xlu1 %501 }
 0x160   : > { %v688_v54 = vld [vmem:[#allocation2 + $0x8] sm:$0xff]  ;;  %526 = vst.msk [vmem:[#allocation2] sm:$0xfe] %vm525_vm13, %v502_v53 }
 0x161   : > { %842 = vmatprep.mubr.f32.mxu1 %v688_v54  ;;  %v599_v55 = vpop.permute.xlu0 %598 }
 0x163   : > { %v460_v56 = vpop.permute.xlu1 %459 }
 0x164   : > { %481 = vst.msk [vmem:[#allocation2 + $0x18] sm:$0x7f] %vm480_vm12, %v460_v56 }
 0x165   : > { %527 = vst.msk [vmem:[#allocation2 + $0x18] sm:$0xfe] %vm525_vm13, %v504_v49  ;;  %v559_v57 = vpop.permute.xlu0 %558 }
 0x166   : > { %536 = vst.msk [vmem:[#allocation2 + $0x18] sm:$0x1] %vm534_vm6, %v1238_v12 }
 0x167   : > { %580 = vst.msk [vmem:[#allocation2 + $0x50] sm:$0x7f] %vm576_vm9, %v559_v57  ;;  %v429_v58 = vpop.permute.xlu1 %428  ;;  %v687_v59 = vld [vmem:[#allocation2] sm:$0xff] }
 0x168   : > { %628 = vst.msk [vmem:[#allocation2 + $0x50] sm:$0x1] %vm490_vm7, %v1238_v12  ;;  %843 = vmatmul.mubr.f32.vlgmr.msra.gmra.mxu1 %v687_v59 }
 0x169   : > { %447 = vst.msk [vmem:[#allocation2 + $0x60] sm:$0xff] %vm443_vm2, %v429_v58  ;;  %v597_v60 = vpop.permute.xlu0 %596 }
 0x16a   : > { %495 = vst.msk [vmem:[#allocation2 + $0x67] sm:$0x1] %vm490_vm7, %v1238_v12 }
 0x16b   : > { %617 = vst.msk [vmem:[#allocation2 + $0x20] sm:$0xfe] %vm615_vm10, %v597_v60  ;;  %v427_v61 = vpop.permute.xlu1 %426 }
 0x16c   : > { %656 = vst.msk [vmem:[#allocation2 + $0x20] sm:$0xff] %vm654_vm11, %v636_v52 }
 0x16d   : > { %446 = vst.msk [vmem:[#allocation2 + $0x48] sm:$0xff] %vm443_vm2, %v427_v61  ;;  %v557_v62 = vpop.permute.xlu0 %556  ;;  %v690_v3 = vld [vmem:[#allocation2 + $0x18] sm:$0xff] }
 0x16e   : > { %494 = vst.msk [vmem:[#allocation2 + $0x4f] sm:$0x1] %vm490_vm7, %v1238_v12 }
 0x16f   : > { %579 = vst.msk [vmem:[#allocation2 + $0x38] sm:$0x7f] %vm576_vm9, %v557_v62  ;;  %v508_v63 = vpop.permute.xlu1 %507 }
 0x170   : > { %618 = vst.msk [vmem:[#allocation2 + $0x38] sm:$0xfe] %vm615_vm10, %v599_v55 }
 0x171   : > { %627 = vst.msk [vmem:[#allocation2 + $0x38] sm:$0x1] %vm490_vm7, %v1238_v12  ;;  %v642_v0 = vpop.permute.xlu0 %641 }
 0x172   : > { %657 = vst.msk [vmem:[#allocation2 + $0x38] sm:$0xff] %vm654_vm11, %v638_v50  ;;  %v1784_v50 = vld [vmem:[%s1832_s4] ss:$0 sm:$0xff] }
 0x173   : > { %v691_v1 = vld [vmem:[#allocation2 + $0x20] sm:$0xff]  ;;  %v466_v2 = vpop.permute.xlu1 %465 }
 0x174   : > { %847 = vmatprep.mubr.f32.mxu1 %v691_v1  ;;  %484 = vst.msk [vmem:[#allocation2 + $0x60] sm:$0x7f] %vm480_vm12, %v466_v2 }
 0x175   : > { %848 = vmatmul.mubr.f32.gmra.mxu1 %v690_v3  ;;  %539 = vst.msk [vmem:[#allocation2 + $0x60] sm:$0x1] %vm534_vm6, %v1238_v12  ;;  %v640_v13 = vpop.permute.xlu0 %639 }
 0x177   : > { %v506_v14 = vpop.permute.xlu1 %505 }
 0x178   : > { %528 = vst.msk [vmem:[#allocation2 + $0x30] sm:$0xfe] %vm525_vm13, %v506_v14 }
 0x179   : > { %v694_v15 = vld [vmem:[#allocation2 + $0x38] sm:$0xff]  ;;  %v603_v16 = vpop.permute.xlu0 %602 }
 0x17a   : > { %852 = vmatprep.mubr.f32.mxu1 %v694_v15 }
 0x17b   : > { %v464_v17 = vpop.permute.xlu1 %463 }
 0x17c   : > { %483 = vst.msk [vmem:[#allocation2 + $0x48] sm:$0x7f] %vm480_vm12, %v464_v17 }
 0x17d   : > { %529 = vst.msk [vmem:[#allocation2 + $0x48] sm:$0xfe] %vm525_vm13, %v508_v63  ;;  %v563_v18 = vpop.permute.xlu0 %562 }
 0x17e   : > { %538 = vst.msk [vmem:[#allocation2 + $0x48] sm:$0x1] %vm534_vm6, %v1238_v12 }
 0x17f   : > { %582 = vst.msk [vmem:[#allocation2 + $0x80] sm:$0x7f] %vm576_vm9, %v563_v18  ;;  %v433_v19 = vpop.permute.xlu1 %432  ;;  %v693_v20 = vld [vmem:[#allocation2 + $0x30] sm:$0xff] }
 0x180   : > { %630 = vst.msk [vmem:[#allocation2 + $0x80] sm:$0x1] %vm490_vm7, %v1238_v12  ;;  %853 = vmatmul.mubr.f32.gmra.mxu1 %v693_v20 }
 0x181   : > { %449 = vst.msk [vmem:[#allocation2 + $0x90] sm:$0xff] %vm443_vm2, %v433_v19  ;;  %v601_v21 = vpop.permute.xlu0 %600 }
 0x182   : > { %497 = vst.msk [vmem:[#allocation2 + $0x97] sm:$0x1] %vm490_vm7, %v1238_v12 }
 0x183   : > { %619 = vst.msk [vmem:[#allocation2 + $0x50] sm:$0xfe] %vm615_vm10, %v601_v21  ;;  %v431_v22 = vpop.permute.xlu1 %430 }
 0x184   : > { %658 = vst.msk [vmem:[#allocation2 + $0x50] sm:$0xff] %vm654_vm11, %v640_v13 }
 0x185   : > { %448 = vst.msk [vmem:[#allocation2 + $0x78] sm:$0xff] %vm443_vm2, %v431_v22  ;;  %v561_v23 = vpop.permute.xlu0 %560  ;;  %v696_v29 = vld [vmem:[#allocation2 + $0x48] sm:$0xff] }
 0x186   : > { %496 = vst.msk [vmem:[#allocation2 + $0x7f] sm:$0x1] %vm490_vm7, %v1238_v12 }
 0x187   : > { %581 = vst.msk [vmem:[#allocation2 + $0x68] sm:$0x7f] %vm576_vm9, %v561_v23  ;;  %v512_v24 = vpop.permute.xlu1 %511 }
 0x188   : > { %620 = vst.msk [vmem:[#allocation2 + $0x68] sm:$0xfe] %vm615_vm10, %v603_v16 }
 0x189   : > { %629 = vst.msk [vmem:[#allocation2 + $0x68] sm:$0x1] %vm490_vm7, %v1238_v12  ;;  %v646_v25 = vpop.permute.xlu0 %645 }
 0x18a   : > { %659 = vst.msk [vmem:[#allocation2 + $0x68] sm:$0xff] %vm654_vm11, %v642_v0 }
 0x18b   : > { %v697_v26 = vld [vmem:[#allocation2 + $0x50] sm:$0xff]  ;;  %v470_v27 = vpop.permute.xlu1 %469 }
 0x18c   : > { %857 = vmatprep.mubr.f32.mxu1 %v697_v26  ;;  %486 = vst.msk [vmem:[#allocation2 + $0x90] sm:$0x7f] %vm480_vm12, %v470_v27 }
 0x18d   : > { %858 = vmatmul.mubr.f32.gmra.mxu1 %v696_v29  ;;  %541 = vst.msk [vmem:[#allocation2 + $0x90] sm:$0x1] %vm534_vm6, %v1238_v12  ;;  %v644_v28 = vpop.permute.xlu0 %643 }
 0x18f   : > { %v510_v30 = vpop.permute.xlu1 %509 }
 0x190   : > { %530 = vst.msk [vmem:[#allocation2 + $0x60] sm:$0xfe] %vm525_vm13, %v510_v30 }
 0x191   : > { %v700_v31 = vld [vmem:[#allocation2 + $0x68] sm:$0xff]  ;;  %v607_v32 = vpop.permute.xlu0 %606 }
 0x192   : > { %862 = vmatprep.mubr.f32.mxu1 %v700_v31 }
 0x193   : > { %v468_v33 = vpop.permute.xlu1 %467 }
 0x194   : > { %485 = vst.msk [vmem:[#allocation2 + $0x78] sm:$0x7f] %vm480_vm12, %v468_v33 }
 0x195   : > { %531 = vst.msk [vmem:[#allocation2 + $0x78] sm:$0xfe] %vm525_vm13, %v512_v24  ;;  %v605_v34 = vpop.permute.xlu0 %604 }
 0x196   : > { %540 = vst.msk [vmem:[#allocation2 + $0x78] sm:$0x1] %vm534_vm6, %v1238_v12 }
 0x197   : > { %621 = vst.msk [vmem:[#allocation2 + $0x80] sm:$0xfe] %vm615_vm10, %v605_v34  ;;  %v435_v35 = vpop.permute.xlu1 %434  ;;  %v699_v36 = vld [vmem:[#allocation2 + $0x60] sm:$0xff] }
 0x198   : > { %660 = vst.msk [vmem:[#allocation2 + $0x80] sm:$0xff] %vm654_vm11, %v644_v28  ;;  %863 = vmatmul.mubr.f32.gmra.mxu1 %v699_v36 }
 0x199   : > { %450 = vst.msk [vmem:[#allocation2 + $0xa8] sm:$0xff] %vm443_vm2, %v435_v35  ;;  %v565_v37 = vpop.permute.xlu0 %564 }
 0x19a   : > { %498 = vst.msk [vmem:[#allocation2 + $0xaf] sm:$0x1] %vm490_vm7, %v1238_v12 }
 0x19b   : > { %583 = vst.msk [vmem:[#allocation2 + $0x98] sm:$0x7f] %vm576_vm9, %v565_v37  ;;  %v514_v38 = vpop.permute.xlu1 %513 }
 0x19c   : > { %622 = vst.msk [vmem:[#allocation2 + $0x98] sm:$0xfe] %vm615_vm10, %v607_v32 }
 0x19d   : > { %631 = vst.msk [vmem:[#allocation2 + $0x98] sm:$0x1] %vm490_vm7, %v1238_v12  ;;  %v567_v39 = vpop.permute.xlu0 %566  ;;  %v702_v41 = vld [vmem:[#allocation2 + $0x78] sm:$0xff] }
 0x19e   : > { %661 = vst.msk [vmem:[#allocation2 + $0x98] sm:$0xff] %vm654_vm11, %v646_v25 }
 0x19f   : > { %532 = vst.msk [vmem:[#allocation2 + $0x90] sm:$0xfe] %vm525_vm13, %v514_v38  ;;  %v703_v40 = vld [vmem:[#allocation2 + $0x80] sm:$0xff]  ;;  %v516_v43 = vpop.permute.xlu1 %515 }
 0x1a0   : > { %584 = vst.msk [vmem:[#allocation2 + $0xb0] sm:$0x7f] %vm576_vm9, %v567_v39  ;;  %867 = vmatprep.mubr.f32.mxu1 %v703_v40 }
 0x1a1   : > { %624 = vst.msk [vmem:[#allocation2 + $0xb0] sm:$0xff] %vm488_vm8, %v1238_v12  ;;  %868 = vmatmul.mubr.f32.gmra.mxu1 %v702_v41  ;;  %v472_v42 = vpop.permute.xlu0 %471 }
 0x1a2   : > { %632 = vst.msk [vmem:[#allocation2 + $0xb0] sm:$0x1] %vm490_vm7, %v1238_v12 }
 0x1a3   : > { %662 = vst.msk [vmem:[#allocation2 + $0xb0] sm:$0xff] %vm654_vm11, %v1238_v12 }
 0x1a4   : > { %487 = vst.msk [vmem:[#allocation2 + $0xa8] sm:$0x7f] %vm480_vm12, %v472_v42 }
 0x1a5   : > { %533 = vst.msk [vmem:[#allocation2 + $0xa8] sm:$0xfe] %vm525_vm13, %v516_v43  ;;  %v706_v44 = vld [vmem:[#allocation2 + $0x98] sm:$0xff] }
 0x1a6   : > { %542 = vst.msk [vmem:[#allocation2 + $0xa8] sm:$0x1] %vm534_vm6, %v1238_v12  ;;  %v705_v45 = vld [vmem:[#allocation2 + $0x90] sm:$0xff]  ;;  %872 = vmatprep.mubr.f32.mxu1 %v706_v44 }
 0x1a7   : > { %873 = vmatmul.mubr.f32.gmra.mxu1 %v705_v45 }
 0x1a9   : > { %v1208_v49 = vpop.f32.mrf.mxu0 }
 0x1aa   : > { %v709_v46 = vld [vmem:[#allocation2 + $0xb0] sm:$0xff] }
 0x1ab   : > { %877 = vmatprep.mubr.f32.mxu1 %v709_v46  ;;  %v949_v53 = vpop.f32.mrf.mxu0 }
 0x1ad   : > { %v708_v47 = vld [vmem:[#allocation2 + $0xa8] sm:$0xff]  ;;  %v1211_v0 = vpop.f32.mrf.mxu0 }
 0x1ae   : > { %878 = vmatmul.mubr.f32.gmra.mxu1 %v708_v47 }
 0x1af   : > { %v959_v13 = vpop.f32.mrf.mxu0 }
 0x1b1   : > { %v1214_v24 = vpop.f32.mrf.mxu0 }
 0x1b3   : > { %v969_v27 = vpop.f32.mrf.mxu0 }
 0x1b5   : > { %v1217_v35 = vpop.f32.mrf.mxu0 }
 0x1b7   : > { %v979_v40 = vpop.f32.mrf.mxu0 }
 0x228   : > { %v1142_v48 = vpop.f32.mrf.mxu1 }
 0x22a   : > { %v1143_v51 = vpop.f32.mrf.mxu1 }
 0x22b   : > { %v1144_v52 = vadd.f32 %v1143_v51, %v1142_v48 }
 0x22d   : > { %v845_v12 = vadd.f32 %v1144_v52, %v1784_v50 }
 0x22f   : > { %v950_v54 = vadd.f32 %v949_v53, %v845_v12 }
 0x231   : > { %v988_v55 = vadd.f32 %v950_v54, %v1300_v4 }
 0x233   : > { %v996_v56 = vmax.f32 %v988_v55, 0.0 }
 0x235   : > { %v1145_v57 = vpop.f32.mrf.mxu1  ;;  %1004 = vst.msk [vmem:[%s1793_s24] sm:$0xff] %vm244_vm0, %v996_v56 }
 0x237   : > { %v1146_v58 = vpop.f32.mrf.mxu1 }
 0x238   : > { %v1147_v59 = vadd.f32 %v1146_v58, %v1145_v57 }
 0x23a   : > { %v850_v60 = vadd.f32 %v1147_v59, %v1784_v50 }
 0x23c   : > { %v955_v61 = vadd.f32 %v1208_v49, %v850_v60 }
 0x23e   : > { %v989_v4 = vadd.f32 %v955_v61, %v1302_v5 }
 0x240   : > { %v997_v62 = vmax.f32 %v989_v4, 0.0  ;;  %v1148_v63 = vpop.f32.mrf.mxu1 }
 0x242   : > { %1005 = vst.msk [vmem:[%s1793_s24 + $0x8] sm:$0xff] %vm244_vm0, %v997_v62  ;;  %v1149_v1 = vpop.f32.mrf.mxu1 }
 0x243   : > { %v1150_v2 = vadd.f32 %v1149_v1, %v1148_v63 }
 0x245   : > { %v855_v3 = vadd.f32 %v1150_v2, %v1784_v50 }
 0x247   : > { %v960_v14 = vadd.f32 %v959_v13, %v855_v3 }
 0x249   : > { %v990_v15 = vadd.f32 %v960_v14, %v1306_v6 }
 0x24b   : > { %v998_v16 = vmax.f32 %v990_v15, 0.0 }
 0x24d   : > { %v1151_v17 = vpop.f32.mrf.mxu1  ;;  %1006 = vst.msk [vmem:[%s1793_s24 + $0x10] sm:$0xff] %vm244_vm0, %v998_v16 }
 0x24f   : > { %v1152_v18 = vpop.f32.mrf.mxu1 }
 0x250   : > { %v1153_v5 = vadd.f32 %v1152_v18, %v1151_v17 }
 0x252   : > { %v860_v19 = vadd.f32 %v1153_v5, %v1784_v50 }
 0x254   : > { %v965_v20 = vadd.f32 %v1211_v0, %v860_v19 }
 0x256   : > { %v991_v21 = vadd.f32 %v965_v20, %v1312_v7 }
 0x258   : > { %v999_v22 = vmax.f32 %v991_v21, 0.0  ;;  %v1154_v23 = vpop.f32.mrf.mxu1 }
 0x25a   : > { %1007 = vst.msk [vmem:[%s1793_s24 + $0x18] sm:$0xff] %vm244_vm0, %v999_v22  ;;  %v1155_v25 = vpop.f32.mrf.mxu1 }
 0x25b   : > { %v1156_v26 = vadd.f32 %v1155_v25, %v1154_v23 }
 0x25d   : > { %v865_v6 = vadd.f32 %v1156_v26, %v1784_v50 }
 0x25f   : > { %v970_v29 = vadd.f32 %v969_v27, %v865_v6 }
 0x261   : > { %v1157_v28 = vpop.f32.mrf.mxu1  ;;  %v992_v30 = vadd.f32 %v970_v29, %v1314_v8 }
 0x263   : > { %v1158_v31 = vpop.f32.mrf.mxu1  ;;  %v1000_v32 = vmax.f32 %v992_v30, 0.0 }
 0x264   : > { %v1159_v33 = vadd.f32 %v1158_v31, %v1157_v28 }
 0x265   : > { %1008 = vst.msk [vmem:[%s1793_s24 + $0x20] sm:$0xff] %vm244_vm0, %v1000_v32 }
 0x266   : > { %v870_v7 = vadd.f32 %v1159_v33, %v1784_v50 }
 0x267   : > { %v1160_v34 = vpop.f32.mrf.mxu1 }
 0x268   : > { %v975_v36 = vadd.f32 %v1214_v24, %v870_v7 }
 0x269   : > { %v1161_v37 = vpop.f32.mrf.mxu1 }
 0x26a   : > { %v1162_v38 = vadd.f32 %v1161_v37, %v1160_v34  ;;  %v993_v39 = vadd.f32 %v975_v36, %v1320_v9 }
 0x26c   : > { %v875_v8 = vadd.f32 %v1162_v38, %v1784_v50  ;;  %v1001_v41 = vmax.f32 %v993_v39, 0.0 }
 0x26e   : > { %v1163_v42 = vpop.f32.mrf.mxu1  ;;  %v980_v43 = vadd.f32 %v979_v40, %v875_v8  ;;  %1009 = vst.msk [vmem:[%s1793_s24 + $0x28] sm:$0xff] %vm244_vm0, %v1001_v41 }
 0x270   : > { %v1164_v44 = vpop.f32.mrf.mxu1  ;;  %v994_v45 = vadd.f32 %v980_v43, %v1322_v10 }
 0x271   : > { %v1165_v46 = vadd.f32 %v1164_v44, %v1163_v42 }
 0x272   : > { %v1002_v47 = vmax.f32 %v994_v45, 0.0 }
 0x273   : > { %v880_v48 = vadd.f32 %v1165_v46, %v1784_v50 }
 0x274   : > { %1010 = vst.msk [vmem:[%s1793_s24 + $0x30] sm:$0xff] %vm244_vm0, %v1002_v47 }
 0x275   : > { %v985_v49 = vadd.f32 %v1217_v35, %v880_v48 }
 0x277   : > { %v995_v9 = vadd.f32 %v985_v49, %v1328_v11 }
 0x279   : > { %v1003_v51 = vmax.f32 %v995_v9, 0.0 }
 0x27b   : > { %1011 = vst.msk [vmem:[%s1793_s24 + $0x38] sm:$0xff] %vm244_vm0, %v1003_v51 }
 0x27c PF: > { %s15_s18 = sadd.s32 1, %s1236_s18  }
 0x27d   : > { %p12_p4 = scmp.ge.s32.totalorder %s15_s18, 4  }
 0x27f   :  { %14 = sbr.rel (!%p12_p4) target bundleno = 1 (0x1), region = 72 }

// kernel: tpu_custom_call.1
= control target key start
LH: loop header
LB: loop body
LE: loop exit
PB: predicated region body
PF: predicated region fallthrough
CT: control target
= control target key end

     0   :  { %s1272_s18 = smov 0   ;;  %s1828_s0 = inlined_call_operand.vmem [shape: f32[2,64,32], index: 0, kind: input, shape index: {}]   ;;  %s1829_s1 = inlined_call_operand.vmem [shape: f32[32,32], index: 1, kind: input, shape index: {}]   ;;  %s1830_s2 = inlined_call_operand.vmem [shape: f32[288,32], index: 2, kind: input, shape index: {}]   ;;  %s1831_s3 = inlined_call_operand.vmem [shape: f32[1,32], index: 3, kind: input, shape index: {}]   ;;  %s1832_s4 = inlined_call_operand.vmem [shape: f32[1,32], index: 4, kind: input, shape index: {}]   ;;  %s1833_s5 = inlined_call_operand.vmem [shape: f32[2,64,32], index: 5, kind: output, shape index: {}]  }
   0x1 LB: > { %s1067_s19 = sadd.s32 4294967295, %s1236_s18   ;;  %p1071_p0 = scmp.ge.s32.totalorder %s1236_s18, 1  ;;  %s1236_s18 = sphi %s1272_s18, %s15_s18  }
   0x2   : > { %p187_p1 = scmp.lt.s32.totalorder %s1236_s18, 3 }
   0x4   : > { %p188_p2 = pnand %p1071_p0, %p187_p1 }
   0x5   : > { %p215_p3 = scmp.lt.s32.totalorder (!%p188_p2), %s1067_s19, 1  ;;  %s1239_s9 = smov (!%p188_p2), 96  }
   0x6   : > { %191 = sbr.rel (%p188_p2) target bundleno = 636 (0x27c), region = 40  ;;  %s1240_s14 = smov (!%p188_p2), 64  }
   0x7   : > { %s1241_s21 = smov (!%p188_p2), 32  }
   0xb   : > { %v236_v0 = vld [vmem:[%s1829_s1 + $0x18] sm:$0xff]  ;;  %v235_v1 = vld [vmem:[%s1829_s1 + $0x10] sm:$0xff]  ;;  %v234_v2 = vld [vmem:[%s1829_s1 + $0x8] sm:$0xff]  ;;  %s1835_s19 = smov (!%p215_p3, %s1067_s19), 1  ;;  %vm244_vm0 = vcmask 261120   ;;  %vm413_vm1 = vcmask 253952  }
   0xc   : > { %1178 = vmatprep.subr.mxu0 %v236_v0  ;;  %v233_v3 = vld [vmem:[%s1829_s1] sm:$0xff]  ;;  %s1096_s28 = sshll.u32 %s1835_s19, 6  ;;  %v1238_v12 = vmov 0.0   ;;  %v746_v13 = vld [vmem:[%s1830_s2 + $0x118] sm:$0xff]  ;;  %v745_v14 = vld [vmem:[%s1830_s2 + $0x110] sm:$0xff]  ;;  %vm443_vm2 = vcmask 523520  }
   0xd   : > { %1179 = vmatpush3.msra.mxu0 %v236_v0  ;;  %s219_s6 = scalar_lea.vmem %s1828_s0, %s1096_s28  ;;  %679 = vst.msk [vmem:[#allocation2 + $0x17] sm:$0x1] %vm413_vm1, %v1238_v12  ;;  %415 = vst.msk [vmem:[#allocation2 + $0x18] sm:$0x1] %vm413_vm1, %v1238_v12  ;;  %v744_v15 = vld [vmem:[%s1830_s2 + $0x108] sm:$0xff]  ;;  %v743_v16 = vld [vmem:[%s1830_s2 + $0x100] sm:$0xff]  ;;  %s1793_s24 = scalar_lea.vmem %s1833_s5, %s1096_s28 }
   0xe   : > { %1180 = vmatprep.subr.mxu0 %v235_v1  ;;  %v1300_v4 = vld [vmem:[%s219_s6] sm:$0xff]  ;;  %v1302_v5 = vld [vmem:[%s219_s6 + $0x8] sm:$0xff]  ;;  %v1306_v6 = vld [vmem:[%s219_s6 + $0x10] sm:$0xff]  ;;  %412 = vst.msk [vmem:[#allocation2] sm:$0xff] %vm244_vm0, %v1238_v12  ;;  %vm670_vm3 = vcmask 260096   ;;  %vm404_vm4 = vcmask 261121  }
   0xf   : > { %1181 = vmatpush3.msra.mxu0 %v235_v1  ;;  %1186 = vmatprep.mubr.msk.f32.mxu0 %vm244_vm0, %v1300_v4  ;;  %v1312_v7 = vld [vmem:[%s219_s6 + $0x18] sm:$0xff]  ;;  %v1314_v8 = vld [vmem:[%s219_s6 + $0x20] sm:$0xff]  ;;  %v1320_v9 = vld [vmem:[%s219_s6 + $0x28] sm:$0xff]  ;;  %416 = vst.msk [vmem:[#allocation2 + $0x30] sm:$0x1] %vm413_vm1, %v1238_v12  ;;  %vm585_vm5 = vcmask 516352  }
  0x10   : > { %1182 = vmatprep.subr.mxu0 %v234_v2  ;;  %v1322_v10 = vld [vmem:[%s219_s6 + $0x30] sm:$0xff]  ;;  %v1328_v11 = vld [vmem:[%s219_s6 + $0x38] sm:$0xff]  ;;  %417 = vst.msk [vmem:[#allocation2 + $0x48] sm:$0x1] %vm413_vm1, %v1238_v12  ;;  %418 = vst.msk [vmem:[#allocation2 + $0x60] sm:$0x1] %vm413_vm1, %v1238_v12 }
  0x11   : > { %1183 = vmatpush3.msra.mxu0 %v234_v2  ;;  %419 = vst.msk [vmem:[#allocation2 + $0x78] sm:$0x1] %vm413_vm1, %v1238_v12  ;;  %420 = vst.msk [vmem:[#allocation2 + $0x90] sm:$0x1] %vm413_vm1, %v1238_v12  ;;  %v742_v17 = vld [vmem:[%s1830_s2 + $0xf8] sm:$0xff]  ;;  %v741_v19 = vld [vmem:[%s1830_s2 + $0xf0] sm:$0xff] }
  0x12   : > { %1184 = vmatprep.subr.mxu0 %v233_v3  ;;  %421 = vst.msk [vmem:[#allocation2 + $0xa8] sm:$0x1] %vm413_vm1, %v1238_v12  ;;  %680 = vst.msk [vmem:[#allocation2 + $0x2f] sm:$0x1] %vm413_vm1, %v1238_v12  ;;  %v726_v18 = vld [vmem:[%s1830_s2 + $0x78] sm:$0xff]  ;;  %1110 = vmatprep.subr.mxu1 %v742_v17  ;;  %v725_v20 = vld [vmem:[%s1830_s2 + $0x70] sm:$0xff] }
  0x13   : > { %1185 = vmatpush3.msra.mxu0 %v233_v3  ;;  %678 = vst.msk [vmem:[#allocation2 + $0xb8] sm:$0xff] %vm244_vm0, %v1238_v12  ;;  %1111 = vmatpush3.msra.mxu1 %v726_v18  ;;  %v740_v21 = vld [vmem:[%s1830_s2 + $0xe8] sm:$0xff]  ;;  %v739_v23 = vld [vmem:[%s1830_s2 + $0xe0] sm:$0xff]  ;;  %v738_v25 = vld [vmem:[%s1830_s2 + $0xd8] sm:$0xff]  ;;  %vm534_vm6 = vcmask 1041152   ;;  %vm490_vm7 = vcmask 778752  }
  0x14   : > { %1187 = vmatmul.mubr.msk.f32.vlgmr.msra.gmra.mxu0 %vm244_vm0, %v1302_v5  ;;  %681 = vst.msk [vmem:[#allocation2 + $0x47] sm:$0x1] %vm413_vm1, %v1238_v12  ;;  %682 = vst.msk [vmem:[#allocation2 + $0x5f] sm:$0x1] %vm413_vm1, %v1238_v12  ;;  %1198 = vmatprep.subr.mxu0 %v746_v13  ;;  %v724_v22 = vld [vmem:[%s1830_s2 + $0x68] sm:$0xff]  ;;  %v723_v24 = vld [vmem:[%s1830_s2 + $0x60] sm:$0xff] }
  0x15   : > { %1189 = vmatprep.mubr.msk.f32.mxu0 %vm244_vm0, %v1306_v6  ;;  %683 = vst.msk [vmem:[#allocation2 + $0x77] sm:$0x1] %vm413_vm1, %v1238_v12  ;;  %684 = vst.msk [vmem:[#allocation2 + $0x8f] sm:$0x1] %vm413_vm1, %v1238_v12  ;;  %1199 = vmatpush3.msra.mxu0 %v746_v13  ;;  %v722_v26 = vld [vmem:[%s1830_s2 + $0x58] sm:$0xff]  ;;  %v737_v27 = vld [vmem:[%s1830_s2 + $0xd0] sm:$0xff] }
  0x16   : > { %685 = vst.msk [vmem:[#allocation2 + $0xa7] sm:$0x1] %vm413_vm1, %v1238_v12  ;;  %414 = vst.msk [vmem:[#allocation2] sm:$0x1] %vm413_vm1, %v1238_v12  ;;  %1200 = vmatprep.subr.mxu0 %v745_v14  ;;  %1112 = vmatprep.subr.mxu1 %v741_v19  ;;  %v1418_v28 = vld [vmem:[%s1831_s3] ss:$0 sm:$0xff] }
  0x17   : > { %686 = vst.msk [vmem:[#allocation2 + $0xbf] sm:$0x1] %vm413_vm1, %v1238_v12  ;;  %1201 = vmatpush3.msra.mxu0 %v745_v14  ;;  %1113 = vmatpush3.msra.mxu1 %v725_v20  ;;  %v721_v29 = vld [vmem:[%s1830_s2 + $0x50] sm:$0xff]  ;;  %v736_v30 = vld [vmem:[%s1830_s2 + $0xc8] sm:$0xff]  ;;  %v735_v34 = vld [vmem:[%s1830_s2 + $0xc0] sm:$0xff]  ;;  %vm488_vm8 = vcmask 785920  }
  0x18   : > { %1190 = vmatmul.mubr.msk.f32.gmra.mxu0 %vm244_vm0, %v1312_v7  ;;  %1202 = vmatprep.subr.mxu0 %v744_v15  ;;  %451 = vst.msk [vmem:[#allocation2] sm:$0xff] %vm443_vm2, %v1238_v12  ;;  %v720_v32 = vld [vmem:[%s1830_s2 + $0x48] sm:$0xff]  ;;  %v719_v36 = vld [vmem:[%s1830_s2 + $0x40] sm:$0xff]  ;;  %v734_v39 = vld [vmem:[%s1830_s2 + $0xb8] sm:$0xff]  ;;  %vm576_vm9 = vcmask 522496   ;;  %vm615_vm10 = vcmask 785921  }
  0x19   : > { %1192 = vmatprep.mubr.msk.f32.mxu0 %vm244_vm0, %v1314_v8  ;;  %1203 = vmatpush3.msra.mxu0 %v744_v15  ;;  %v718_v41 = vld [vmem:[%s1830_s2 + $0x38] sm:$0xff]  ;;  %v733_v46 = vld [vmem:[%s1830_s2 + $0xb0] sm:$0xff]  ;;  %v732_v52 = vld [vmem:[%s1830_s2 + $0xa8] sm:$0xff]  ;;  %489 = vst.msk [vmem:[#allocation2] sm:$0xff] %vm488_vm8, %v1238_v12  ;;  %vm654_vm11 = vcmask 1048320   ;;  %vm480_vm12 = vcmask 784896  }
  0x1a   : > { %1204 = vmatprep.subr.mxu0 %v743_v16  ;;  %1114 = vmatprep.subr.mxu1 %v740_v21  ;;  %v717_v47 = vld [vmem:[%s1830_s2 + $0x30] sm:$0xff]  ;;  %v716_v54 = vld [vmem:[%s1830_s2 + $0x28] sm:$0xff]  ;;  %v731_v59 = vld [vmem:[%s1830_s2 + $0xa0] sm:$0xff]  ;;  %491 = vst.msk [vmem:[#allocation2 + $0x7] sm:$0x1] %vm490_vm7, %v1238_v12  ;;  %vm525_vm13 = vcmask 1048321  }
  0x1b   : > { %1205 = vmatpush3.msra.mxu0 %v743_v16  ;;  %1115 = vmatpush3.msra.mxu1 %v724_v22  ;;  %v715_v60 = vld [vmem:[%s1830_s2 + $0x20] sm:$0xff]  ;;  %v730_v2 = vld [vmem:[%s1830_s2 + $0x98] sm:$0xff]  ;;  %535 = vst.msk [vmem:[#allocation2] sm:$0x1] %vm534_vm6, %v1238_v12  ;;  %v729_v19 = vld [vmem:[%s1830_s2 + $0x90] sm:$0xff] }
  0x1c   : > { %1193 = vmatmul.mubr.msk.f32.gmra.mxu0 %vm244_vm0, %v1320_v9  ;;  %1116 = vmatprep.subr.mxu1 %v739_v23  ;;  %v714_v14 = vld [vmem:[%s1830_s2 + $0x18] sm:$0xff]  ;;  %v713_v20 = vld [vmem:[%s1830_s2 + $0x10] sm:$0xff] }
  0x1d   : > { %1195 = vmatprep.mubr.msk.f32.mxu0 %vm244_vm0, %v1322_v10  ;;  %1117 = vmatpush3.msra.mxu1 %v723_v24 }
  0x1e   : > { %1118 = vmatprep.subr.mxu1 %v738_v25 }
  0x1f   : > { %1119 = vmatpush3.msra.mxu1 %v722_v26 }
  0x20   : > { %1196 = vmatmul.mubr.msk.f32.gmra.mxu0 %vm244_vm0, %v1328_v11  ;;  %1120 = vmatprep.subr.mxu1 %v737_v27  ;;  %v728_v27 = vld [vmem:[%s1830_s2 + $0x88] sm:$0xff] }
  0x21   : > { %1121 = vmatpush3.msra.mxu1 %v721_v29  ;;  %v712_v29 = vld [vmem:[%s1830_s2 + $0x8] sm:$0xff] }
  0x22   : > { %1122 = vmatprep.subr.mxu1 %v736_v30 }
  0x23   : > { %1123 = vmatpush3.msra.mxu1 %v720_v32  ;;  %v711_v32 = vld [vmem:[%s1830_s2] sm:$0xff] }
  0x24   : > { %1124 = vmatprep.subr.mxu1 %v735_v34 }
  0x25   : > { %1125 = vmatpush3.msra.mxu1 %v719_v36 }
  0x26   : > { %1126 = vmatprep.subr.mxu1 %v734_v39 }
  0x27   : > { %1127 = vmatpush3.msra.mxu1 %v718_v41 }
  0x28   : > { %1128 = vmatprep.subr.mxu1 %v733_v46 }
  0x29   : > { %1129 = vmatpush3.msra.mxu1 %v717_v47 }
  0x2a   : > { %1130 = vmatprep.subr.mxu1 %v732_v52 }
  0x2b   : > { %1131 = vmatpush3.msra.mxu1 %v716_v54 }
  0x2c   : > { %1132 = vmatprep.subr.mxu1 %v731_v59 }
  0x2d   : > { %1133 = vmatpush3.msra.mxu1 %v715_v60 }
  0x2e   : > { %1134 = vmatprep.subr.mxu1 %v730_v2 }
  0x2f   : > { %1135 = vmatpush3.msra.mxu1 %v714_v14 }
  0x30   : > { %1136 = vmatprep.subr.mxu1 %v729_v19 }
  0x31   : > { %1137 = vmatpush3.msra.mxu1 %v713_v20 }
  0x32   : > { %1138 = vmatprep.subr.mxu1 %v728_v27 }
  0x33   : > { %1139 = vmatpush3.msra.mxu1 %v712_v29 }
  0xd4   : > { %v1188_v31 = vpop.f32.mrf.mxu0 }
  0xd5   : > { %v341_v33 = vadd.f32 %v1188_v31, %v1418_v28  ;;  %v727_v31 = vld [vmem:[%s1830_s2 + $0x80] sm:$0xff] }
  0xd6   : > { %v335_v35 = vpop.f32.mrf.mxu0  ;;  %1140 = vmatprep.subr.mxu1 %v727_v31 }
  0xd7   : > { %v375_v37 = vmax.f32 %v341_v33, 0.0  ;;  %v336_v38 = vadd.f32 %v1418_v28, %v335_v35  ;;  %1141 = vmatpush3.msra.mxu1 %v711_v32 }
  0xd8   : > { %v1191_v40 = vpop.f32.mrf.mxu0 }
  0xd9   : > { %544 = vst.msk [vmem:[#allocation2 + $0x20] sm:$0xff] %vm244_vm0, %v375_v37  ;;  %v1444_v42 = vmax.f32 %v336_v38, 0.0  ;;  %633 = vrot.lane.b32.xlu1 %v375_v37, %s1239_s9  ;;  %v1447_v43 = vrot.slane %v375_v37, 7  ;;  %v351_v44 = vadd.f32 %v1191_v40, %v1418_v28  ;;  %v1450_v45 = vrot.slane %v375_v37, 1 }
  0xda   : > { %v345_v48 = vpop.f32.mrf.mxu0  ;;  %587 = vst.msk [vmem:[#allocation2 + $0x27] sm:$0x1] %vm585_vm5, %v1238_v12 }
  0xdb   : > { %543 = vst.msk [vmem:[#allocation2 + $0x8] sm:$0xff] %vm244_vm0, %v1444_v42  ;;  %594 = vrot.lane.b32.xlu0 %v1447_v43, %s1240_s14  ;;  %v1464_v49 = vmax.f32 %v351_v44, 0.0  ;;  %v346_v50 = vadd.f32 %v1418_v28, %v345_v48  ;;  %v389_v51 = vrot.slane %v1444_v42, 7  ;;  %v452_v3 = vrot.slane %v1444_v42, 1 }
  0xdc   : > { %671 = vst.msk [vmem:[#allocation2 + $0x10] sm:$0x7f] %vm670_vm3, %v1450_v45  ;;  %v1194_v53 = vpop.f32.mrf.mxu0 }
  0xdd   : > { %406 = vst.msk [vmem:[#allocation2 + $0x30] sm:$0xfe] %vm404_vm4, %v1447_v43  ;;  %424 = vrot.lane.b32.xlu1 %v375_v37, %s1241_s21  ;;  %v1482_v55 = vrot.slane %v1464_v49, 1  ;;  %v1486_v56 = vmax.f32 %v346_v50, 0.0  ;;  %405 = vst.msk [vmem:[#allocation2 + $0x18] sm:$0xfe] %vm404_vm4, %v389_v51  ;;  %v361_v58 = vadd.f32 %v1194_v53, %v1418_v28 }
  0xde   : > { %586 = vst.msk [vmem:[#allocation2 + $0xf] sm:$0x1] %vm585_vm5, %v1238_v12  ;;  %v1492_v57 = vrot.slane %v1464_v49, 7  ;;  %v355_v61 = vpop.f32.mrf.mxu0 }
  0xdf   : > { %546 = vst.msk [vmem:[#allocation2 + $0x50] sm:$0xff] %vm244_vm0, %v1464_v49  ;;  %554 = vrot.lane.b32.xlu0 %v1450_v45, %s1241_s21  ;;  %v1508_v62 = vrot.slane %v1486_v56, 1  ;;  %545 = vst.msk [vmem:[#allocation2 + $0x38] sm:$0xff] %vm244_vm0, %v1486_v56  ;;  %v1514_v63 = vmax.f32 %v361_v58, 0.0  ;;  %v1517_v0 = vrot.slane %v1486_v56, 7  ;;  %v356_v1 = vadd.f32 %v1418_v28, %v355_v61 }
  0xe0   : > { %589 = vst.msk [vmem:[#allocation2 + $0x57] sm:$0x1] %vm585_vm5, %v1238_v12  ;;  %v1197_v13 = vpop.f32.mrf.mxu0  ;;  %588 = vst.msk [vmem:[#allocation2 + $0x3f] sm:$0x1] %vm585_vm5, %v1238_v12 }
  0xe1   : > { %673 = vst.msk [vmem:[#allocation2 + $0x40] sm:$0x7f] %vm670_vm3, %v1482_v55  ;;  %672 = vst.msk [vmem:[#allocation2 + $0x28] sm:$0x7f] %vm670_vm3, %v1508_v62  ;;  %422 = vrot.lane.b32.xlu1 %v1444_v42, %s1241_s21  ;;  %v1540_v15 = vrot.slane %v1514_v63, 1  ;;  %v1546_v16 = vmax.f32 %v356_v1, 0.0  ;;  %v371_v18 = vadd.f32 %v1197_v13, %v1418_v28 }
  0xe2   : > { %408 = vst.msk [vmem:[#allocation2 + $0x60] sm:$0xfe] %vm404_vm4, %v1492_v57  ;;  %407 = vst.msk [vmem:[#allocation2 + $0x48] sm:$0xfe] %vm404_vm4, %v1517_v0  ;;  %v1549_v17 = vrot.slane %v1514_v63, 7  ;;  %v365_v22 = vpop.f32.mrf.mxu0  ;;  %v710_v42 = vld [vmem:[#allocation2 + $0xb8] sm:$0xff] }
  0xe3   : > { %548 = vst.msk [vmem:[#allocation2 + $0x80] sm:$0xff] %vm244_vm0, %v1514_v63  ;;  %v689_v21 = vld [vmem:[#allocation2 + $0x10] sm:$0xff]  ;;  %552 = vrot.lane.b32.xlu0 %v452_v3, %s1241_s21  ;;  %v1567_v23 = vrot.slane %v1546_v16, 1  ;;  %547 = vst.msk [vmem:[#allocation2 + $0x68] sm:$0xff] %vm244_vm0, %v1546_v16  ;;  %v1573_v24 = vmax.f32 %v371_v18, 0.0  ;;  %v1576_v25 = vrot.slane %v1546_v16, 7  ;;  %v366_v26 = vadd.f32 %v1418_v28, %v365_v22 }
  0xe4   : > { %591 = vst.msk [vmem:[#allocation2 + $0x87] sm:$0x1] %vm585_vm5, %v1238_v12  ;;  %1206 = vmatprep.mubr.msk.f32.mxu0 %vm244_vm0, %v689_v21  ;;  %590 = vst.msk [vmem:[#allocation2 + $0x6f] sm:$0x1] %vm585_vm5, %v1238_v12 }
  0xe5   : > { %675 = vst.msk [vmem:[#allocation2 + $0x70] sm:$0x7f] %vm670_vm3, %v1540_v15  ;;  %503 = vrot.lane.b32.xlu1 %v1447_v43, %s1239_s9  ;;  %674 = vst.msk [vmem:[#allocation2 + $0x58] sm:$0x7f] %vm670_vm3, %v1567_v23  ;;  %v551_v28 = vrot.slane %v1573_v24, 1  ;;  %v380_v30 = vmax.f32 %v366_v26, 0.0 }
  0xe6   : > { %410 = vst.msk [vmem:[#allocation2 + $0x90] sm:$0xfe] %vm404_vm4, %v1549_v17  ;;  %409 = vst.msk [vmem:[#allocation2 + $0x78] sm:$0xfe] %vm404_vm4, %v1576_v25  ;;  %v500_v41 = vrot.slane %v1573_v24, 7 }
  0xe7   : > { %550 = vst.msk [vmem:[#allocation2 + $0xb0] sm:$0xff] %vm244_vm0, %v1573_v24  ;;  %637 = vrot.lane.b32.xlu0 %v1464_v49, %s1239_s9  ;;  %v458_v34 = vrot.slane %v380_v30, 1  ;;  %549 = vst.msk [vmem:[#allocation2 + $0x98] sm:$0xff] %vm244_vm0, %v380_v30  ;;  %v395_v35 = vrot.slane %v380_v30, 7 }
  0xe8   : > { %593 = vst.msk [vmem:[#allocation2 + $0xb7] sm:$0x1] %vm585_vm5, %v1238_v12  ;;  %v695_v33 = vld [vmem:[#allocation2 + $0x40] sm:$0xff]  ;;  %v692_v36 = vld [vmem:[#allocation2 + $0x28] sm:$0xff]  ;;  %592 = vst.msk [vmem:[#allocation2 + $0x9f] sm:$0x1] %vm585_vm5, %v1238_v12 }
  0xe9   : > { %677 = vst.msk [vmem:[#allocation2 + $0xa0] sm:$0x7f] %vm670_vm3, %v551_v28  ;;  %461 = vrot.lane.b32.xlu1 %v1450_v45, %s1240_s14  ;;  %1207 = vmatmul.mubr.msk.f32.vlgmr.msra.gmra.mxu0 %vm244_vm0, %v692_v36  ;;  %676 = vst.msk [vmem:[#allocation2 + $0x88] sm:$0x7f] %vm670_vm3, %v458_v34 }
  0xea   : > { %411 = vst.msk [vmem:[#allocation2 + $0xa8] sm:$0xfe] %vm404_vm4, %v395_v35  ;;  %1209 = vmatprep.mubr.msk.f32.mxu0 %vm244_vm0, %v695_v33 }
  0xeb   : > { %635 = vrot.lane.b32.xlu0 %v1486_v56, %s1239_s9 }
  0xec   : > { %v701_v37 = vld [vmem:[#allocation2 + $0x70] sm:$0xff]  ;;  %v698_v38 = vld [vmem:[#allocation2 + $0x58] sm:$0xff] }
  0xed   : > { %501 = vrot.lane.b32.xlu1 %v389_v51, %s1239_s9  ;;  %1210 = vmatmul.mubr.msk.f32.gmra.mxu0 %vm244_vm0, %v698_v38 }
  0xee   : > { %1212 = vmatprep.mubr.msk.f32.mxu0 %vm244_vm0, %v701_v37 }
  0xef   : > { %598 = vrot.lane.b32.xlu0 %v1492_v57, %s1240_s14 }
  0xf0   : > { %v707_v39 = vld [vmem:[#allocation2 + $0xa0] sm:$0xff]  ;;  %v704_v40 = vld [vmem:[#allocation2 + $0x88] sm:$0xff] }
  0xf1   : > { %459 = vrot.lane.b32.xlu1 %v452_v3, %s1240_s14  ;;  %1213 = vmatmul.mubr.msk.f32.gmra.mxu0 %vm244_vm0, %v704_v40 }
  0xf2   : > { %1215 = vmatprep.mubr.msk.f32.mxu0 %vm244_vm0, %v707_v39 }
  0xf3   : > { %558 = vrot.lane.b32.xlu0 %v1482_v55, %s1241_s21 }
  0xf5   : > { %428 = vrot.lane.b32.xlu1 %v1464_v49, %s1241_s21  ;;  %1216 = vmatmul.mubr.msk.f32.gmra.mxu0 %vm244_vm0, %v710_v42 }
  0xf7   : > { %596 = vrot.lane.b32.xlu0 %v1517_v0, %s1240_s14 }
  0xf9   : > { %426 = vrot.lane.b32.xlu1 %v1486_v56, %s1241_s21 }
  0xfb   : > { %556 = vrot.lane.b32.xlu0 %v1508_v62, %s1241_s21 }
  0xfd   : > { %507 = vrot.lane.b32.xlu1 %v1492_v57, %s1239_s9 }
  0xff   : > { %641 = vrot.lane.b32.xlu0 %v1514_v63, %s1239_s9 }
 0x101   : > { %465 = vrot.lane.b32.xlu1 %v1482_v55, %s1240_s14 }
 0x103   : > { %639 = vrot.lane.b32.xlu0 %v1546_v16, %s1239_s9 }
 0x105   : > { %505 = vrot.lane.b32.xlu1 %v1517_v0, %s1239_s9 }
 0x107   : > { %602 = vrot.lane.b32.xlu0 %v1549_v17, %s1240_s14 }
 0x109   : > { %463 = vrot.lane.b32.xlu1 %v1508_v62, %s1240_s14 }
 0x10b   : > { %562 = vrot.lane.b32.xlu0 %v1540_v15, %s1241_s21 }
 0x10d   : > { %432 = vrot.lane.b32.xlu1 %v1514_v63, %s1241_s21 }
 0x10f   : > { %600 = vrot.lane.b32.xlu0 %v1576_v25, %s1240_s14 }
 0x111   : > { %430 = vrot.lane.b32.xlu1 %v1546_v16, %s1241_s21 }
 0x113   : > { %560 = vrot.lane.b32.xlu0 %v1567_v23, %s1241_s21 }
 0x115   : > { %511 = vrot.lane.b32.xlu1 %v1549_v17, %s1239_s9 }
 0x117   : > { %645 = vrot.lane.b32.xlu0 %v1573_v24, %s1239_s9 }
 0x119   : > { %469 = vrot.lane.b32.xlu1 %v1540_v15, %s1240_s14 }
 0x11b   : > { %643 = vrot.lane.b32.xlu0 %v380_v30, %s1239_s9 }
 0x11d   : > { %509 = vrot.lane.b32.xlu1 %v1576_v25, %s1239_s9 }
 0x11f   : > { %606 = vrot.lane.b32.xlu0 %v500_v41, %s1240_s14 }
 0x121   : > { %467 = vrot.lane.b32.xlu1 %v1567_v23, %s1240_s14 }
 0x123   : > { %604 = vrot.lane.b32.xlu0 %v395_v35, %s1240_s14 }
 0x125   : > { %434 = vrot.lane.b32.xlu1 %v380_v30, %s1241_s21 }
 0x127   : > { %564 = vrot.lane.b32.xlu0 %v458_v34, %s1241_s21 }
 0x129   : > { %513 = vrot.lane.b32.xlu1 %v395_v35, %s1239_s9 }
 0x12b   : > { %566 = vrot.lane.b32.xlu0 %v551_v28, %s1241_s21 }
 0x12d   : > { %515 = vrot.lane.b32.xlu1 %v500_v41, %s1239_s9 }
 0x12f   : > { %471 = vrot.lane.b32.xlu0 %v458_v34, %s1240_s14 }
 0x14b   : > { %v634_v43 = vpop.permute.xlu1 %633 }
 0x14d   : > { %v595_v44 = vpop.permute.xlu0 %594 }
 0x14f   : > { %v425_v45 = vpop.permute.xlu1 %424 }
 0x150   : > { %445 = vst.msk [vmem:[#allocation2 + $0x30] sm:$0xff] %vm443_vm2, %v425_v45 }
 0x151   : > { %493 = vst.msk [vmem:[#allocation2 + $0x37] sm:$0x1] %vm490_vm7, %v1238_v12  ;;  %v555_v46 = vpop.permute.xlu0 %554 }
 0x152   : > { %578 = vst.msk [vmem:[#allocation2 + $0x20] sm:$0x7f] %vm576_vm9, %v555_v46 }
 0x153   : > { %626 = vst.msk [vmem:[#allocation2 + $0x20] sm:$0x1] %vm490_vm7, %v1238_v12  ;;  %v423_v47 = vpop.permute.xlu1 %422 }
 0x154   : > { %444 = vst.msk [vmem:[#allocation2 + $0x18] sm:$0xff] %vm443_vm2, %v423_v47 }
 0x155   : > { %492 = vst.msk [vmem:[#allocation2 + $0x1f] sm:$0x1] %vm490_vm7, %v1238_v12  ;;  %v553_v48 = vpop.permute.xlu0 %552 }
 0x156   : > { %577 = vst.msk [vmem:[#allocation2 + $0x8] sm:$0x7f] %vm576_vm9, %v553_v48 }
 0x157   : > { %616 = vst.msk [vmem:[#allocation2 + $0x8] sm:$0xfe] %vm615_vm10, %v595_v44  ;;  %v504_v49 = vpop.permute.xlu1 %503 }
 0x158   : > { %625 = vst.msk [vmem:[#allocation2 + $0x8] sm:$0x1] %vm490_vm7, %v1238_v12 }
 0x159   : > { %655 = vst.msk [vmem:[#allocation2 + $0x8] sm:$0xff] %vm654_vm11, %v634_v43  ;;  %v638_v50 = vpop.permute.xlu0 %637 }
 0x15b   : > { %v462_v51 = vpop.permute.xlu1 %461 }
 0x15c   : > { %482 = vst.msk [vmem:[#allocation2 + $0x30] sm:$0x7f] %vm480_vm12, %v462_v51 }
 0x15d   : > { %537 = vst.msk [vmem:[#allocation2 + $0x30] sm:$0x1] %vm534_vm6, %v1238_v12  ;;  %v636_v52 = vpop.permute.xlu0 %635 }
 0x15f   : > { %v502_v53 = vpop.permute.xlu1 %501 }
 0x160   : > { %v688_v54 = vld [vmem:[#allocation2 + $0x8] sm:$0xff]  ;;  %526 = vst.msk [vmem:[#allocation2] sm:$0xfe] %vm525_vm13, %v502_v53 }
 0x161   : > { %842 = vmatprep.mubr.f32.mxu1 %v688_v54  ;;  %v599_v55 = vpop.permute.xlu0 %598 }
 0x163   : > { %v460_v56 = vpop.permute.xlu1 %459 }
 0x164   : > { %481 = vst.msk [vmem:[#allocation2 + $0x18] sm:$0x7f] %vm480_vm12, %v460_v56 }
 0x165   : > { %527 = vst.msk [vmem:[#allocation2 + $0x18] sm:$0xfe] %vm525_vm13, %v504_v49  ;;  %v559_v57 = vpop.permute.xlu0 %558 }
 0x166   : > { %536 = vst.msk [vmem:[#allocation2 + $0x18] sm:$0x1] %vm534_vm6, %v1238_v12 }
 0x167   : > { %580 = vst.msk [vmem:[#allocation2 + $0x50] sm:$0x7f] %vm576_vm9, %v559_v57  ;;  %v429_v58 = vpop.permute.xlu1 %428  ;;  %v687_v59 = vld [vmem:[#allocation2] sm:$0xff] }
 0x168   : > { %628 = vst.msk [vmem:[#allocation2 + $0x50] sm:$0x1] %vm490_vm7, %v1238_v12  ;;  %843 = vmatmul.mubr.f32.vlgmr.msra.gmra.mxu1 %v687_v59 }
 0x169   : > { %447 = vst.msk [vmem:[#allocation2 + $0x60] sm:$0xff] %vm443_vm2, %v429_v58  ;;  %v597_v60 = vpop.permute.xlu0 %596 }
 0x16a   : > { %495 = vst.msk [vmem:[#allocation2 + $0x67] sm:$0x1] %vm490_vm7, %v1238_v12 }
 0x16b   : > { %617 = vst.msk [vmem:[#allocation2 + $0x20] sm:$0xfe] %vm615_vm10, %v597_v60  ;;  %v427_v61 = vpop.permute.xlu1 %426 }
 0x16c   : > { %656 = vst.msk [vmem:[#allocation2 + $0x20] sm:$0xff] %vm654_vm11, %v636_v52 }
 0x16d   : > { %446 = vst.msk [vmem:[#allocation2 + $0x48] sm:$0xff] %vm443_vm2, %v427_v61  ;;  %v557_v62 = vpop.permute.xlu0 %556  ;;  %v690_v3 = vld [vmem:[#allocation2 + $0x18] sm:$0xff] }
 0x16e   : > { %494 = vst.msk [vmem:[#allocation2 + $0x4f] sm:$0x1] %vm490_vm7, %v1238_v12 }
 0x16f   : > { %579 = vst.msk [vmem:[#allocation2 + $0x38] sm:$0x7f] %vm576_vm9, %v557_v62  ;;  %v508_v63 = vpop.permute.xlu1 %507 }
 0x170   : > { %618 = vst.msk [vmem:[#allocation2 + $0x38] sm:$0xfe] %vm615_vm10, %v599_v55 }
 0x171   : > { %627 = vst.msk [vmem:[#allocation2 + $0x38] sm:$0x1] %vm490_vm7, %v1238_v12  ;;  %v642_v0 = vpop.permute.xlu0 %641 }
 0x172   : > { %657 = vst.msk [vmem:[#allocation2 + $0x38] sm:$0xff] %vm654_vm11, %v638_v50  ;;  %v1784_v50 = vld [vmem:[%s1832_s4] ss:$0 sm:$0xff] }
 0x173   : > { %v691_v1 = vld [vmem:[#allocation2 + $0x20] sm:$0xff]  ;;  %v466_v2 = vpop.permute.xlu1 %465 }
 0x174   : > { %847 = vmatprep.mubr.f32.mxu1 %v691_v1  ;;  %484 = vst.msk [vmem:[#allocation2 + $0x60] sm:$0x7f] %vm480_vm12, %v466_v2 }
 0x175   : > { %848 = vmatmul.mubr.f32.gmra.mxu1 %v690_v3  ;;  %539 = vst.msk [vmem:[#allocation2 + $0x60] sm:$0x1] %vm534_vm6, %v1238_v12  ;;  %v640_v13 = vpop.permute.xlu0 %639 }
 0x177   : > { %v506_v14 = vpop.permute.xlu1 %505 }
 0x178   : > { %528 = vst.msk [vmem:[#allocation2 + $0x30] sm:$0xfe] %vm525_vm13, %v506_v14 }
 0x179   : > { %v694_v15 = vld [vmem:[#allocation2 + $0x38] sm:$0xff]  ;;  %v603_v16 = vpop.permute.xlu0 %602 }
 0x17a   : > { %852 = vmatprep.mubr.f32.mxu1 %v694_v15 }
 0x17b   : > { %v464_v17 = vpop.permute.xlu1 %463 }
 0x17c   : > { %483 = vst.msk [vmem:[#allocation2 + $0x48] sm:$0x7f] %vm480_vm12, %v464_v17 }
 0x17d   : > { %529 = vst.msk [vmem:[#allocation2 + $0x48] sm:$0xfe] %vm525_vm13, %v508_v63  ;;  %v563_v18 = vpop.permute.xlu0 %562 }
 0x17e   : > { %538 = vst.msk [vmem:[#allocation2 + $0x48] sm:$0x1] %vm534_vm6, %v1238_v12 }
 0x17f   : > { %582 = vst.msk [vmem:[#allocation2 + $0x80] sm:$0x7f] %vm576_vm9, %v563_v18  ;;  %v433_v19 = vpop.permute.xlu1 %432  ;;  %v693_v20 = vld [vmem:[#allocation2 + $0x30] sm:$0xff] }
 0x180   : > { %630 = vst.msk [vmem:[#allocation2 + $0x80] sm:$0x1] %vm490_vm7, %v1238_v12  ;;  %853 = vmatmul.mubr.f32.gmra.mxu1 %v693_v20 }
 0x181   : > { %449 = vst.msk [vmem:[#allocation2 + $0x90] sm:$0xff] %vm443_vm2, %v433_v19  ;;  %v601_v21 = vpop.permute.xlu0 %600 }
 0x182   : > { %497 = vst.msk [vmem:[#allocation2 + $0x97] sm:$0x1] %vm490_vm7, %v1238_v12 }
 0x183   : > { %619 = vst.msk [vmem:[#allocation2 + $0x50] sm:$0xfe] %vm615_vm10, %v601_v21  ;;  %v431_v22 = vpop.permute.xlu1 %430 }
 0x184   : > { %658 = vst.msk [vmem:[#allocation2 + $0x50] sm:$0xff] %vm654_vm11, %v640_v13 }
 0x185   : > { %448 = vst.msk [vmem:[#allocation2 + $0x78] sm:$0xff] %vm443_vm2, %v431_v22  ;;  %v561_v23 = vpop.permute.xlu0 %560  ;;  %v696_v29 = vld [vmem:[#allocation2 + $0x48] sm:$0xff] }
 0x186   : > { %496 = vst.msk [vmem:[#allocation2 + $0x7f] sm:$0x1] %vm490_vm7, %v1238_v12 }
 0x187   : > { %581 = vst.msk [vmem:[#allocation2 + $0x68] sm:$0x7f] %vm576_vm9, %v561_v23  ;;  %v512_v24 = vpop.permute.xlu1 %511 }
 0x188   : > { %620 = vst.msk [vmem:[#allocation2 + $0x68] sm:$0xfe] %vm615_vm10, %v603_v16 }
 0x189   : > { %629 = vst.msk [vmem:[#allocation2 + $0x68] sm:$0x1] %vm490_vm7, %v1238_v12  ;;  %v646_v25 = vpop.permute.xlu0 %645 }
 0x18a   : > { %659 = vst.msk [vmem:[#allocation2 + $0x68] sm:$0xff] %vm654_vm11, %v642_v0 }
 0x18b   : > { %v697_v26 = vld [vmem:[#allocation2 + $0x50] sm:$0xff]  ;;  %v470_v27 = vpop.permute.xlu1 %469 }
 0x18c   : > { %857 = vmatprep.mubr.f32.mxu1 %v697_v26  ;;  %486 = vst.msk [vmem:[#allocation2 + $0x90] sm:$0x7f] %vm480_vm12, %v470_v27 }
 0x18d   : > { %858 = vmatmul.mubr.f32.gmra.mxu1 %v696_v29  ;;  %541 = vst.msk [vmem:[#allocation2 + $0x90] sm:$0x1] %vm534_vm6, %v1238_v12  ;;  %v644_v28 = vpop.permute.xlu0 %643 }
 0x18f   : > { %v510_v30 = vpop.permute.xlu1 %509 }
 0x190   : > { %530 = vst.msk [vmem:[#allocation2 + $0x60] sm:$0xfe] %vm525_vm13, %v510_v30 }
 0x191   : > { %v700_v31 = vld [vmem:[#allocation2 + $0x68] sm:$0xff]  ;;  %v607_v32 = vpop.permute.xlu0 %606 }
 0x192   : > { %862 = vmatprep.mubr.f32.mxu1 %v700_v31 }
 0x193   : > { %v468_v33 = vpop.permute.xlu1 %467 }
 0x194   : > { %485 = vst.msk [vmem:[#allocation2 + $0x78] sm:$0x7f] %vm480_vm12, %v468_v33 }
 0x195   : > { %531 = vst.msk [vmem:[#allocation2 + $0x78] sm:$0xfe] %vm525_vm13, %v512_v24  ;;  %v605_v34 = vpop.permute.xlu0 %604 }
 0x196   : > { %540 = vst.msk [vmem:[#allocation2 + $0x78] sm:$0x1] %vm534_vm6, %v1238_v12 }
 0x197   : > { %621 = vst.msk [vmem:[#allocation2 + $0x80] sm:$0xfe] %vm615_vm10, %v605_v34  ;;  %v435_v35 = vpop.permute.xlu1 %434  ;;  %v699_v36 = vld [vmem:[#allocation2 + $0x60] sm:$0xff] }
 0x198   : > { %660 = vst.msk [vmem:[#allocation2 + $0x80] sm:$0xff] %vm654_vm11, %v644_v28  ;;  %863 = vmatmul.mubr.f32.gmra.mxu1 %v699_v36 }
 0x199   : > { %450 = vst.msk [vmem:[#allocation2 + $0xa8] sm:$0xff] %vm443_vm2, %v435_v35  ;;  %v565_v37 = vpop.permute.xlu0 %564 }
 0x19a   : > { %498 = vst.msk [vmem:[#allocation2 + $0xaf] sm:$0x1] %vm490_vm7, %v1238_v12 }
 0x19b   : > { %583 = vst.msk [vmem:[#allocation2 + $0x98] sm:$0x7f] %vm576_vm9, %v565_v37  ;;  %v514_v38 = vpop.permute.xlu1 %513 }
 0x19c   : > { %622 = vst.msk [vmem:[#allocation2 + $0x98] sm:$0xfe] %vm615_vm10, %v607_v32 }
 0x19d   : > { %631 = vst.msk [vmem:[#allocation2 + $0x98] sm:$0x1] %vm490_vm7, %v1238_v12  ;;  %v567_v39 = vpop.permute.xlu0 %566  ;;  %v702_v41 = vld [vmem:[#allocation2 + $0x78] sm:$0xff] }
 0x19e   : > { %661 = vst.msk [vmem:[#allocation2 + $0x98] sm:$0xff] %vm654_vm11, %v646_v25 }
 0x19f   : > { %532 = vst.msk [vmem:[#allocation2 + $0x90] sm:$0xfe] %vm525_vm13, %v514_v38  ;;  %v703_v40 = vld [vmem:[#allocation2 + $0x80] sm:$0xff]  ;;  %v516_v43 = vpop.permute.xlu1 %515 }
 0x1a0   : > { %584 = vst.msk [vmem:[#allocation2 + $0xb0] sm:$0x7f] %vm576_vm9, %v567_v39  ;;  %867 = vmatprep.mubr.f32.mxu1 %v703_v40 }
 0x1a1   : > { %624 = vst.msk [vmem:[#allocation2 + $0xb0] sm:$0xff] %vm488_vm8, %v1238_v12  ;;  %868 = vmatmul.mubr.f32.gmra.mxu1 %v702_v41  ;;  %v472_v42 = vpop.permute.xlu0 %471 }
 0x1a2   : > { %632 = vst.msk [vmem:[#allocation2 + $0xb0] sm:$0x1] %vm490_vm7, %v1238_v12 }
 0x1a3   : > { %662 = vst.msk [vmem:[#allocation2 + $0xb0] sm:$0xff] %vm654_vm11, %v1238_v12 }
 0x1a4   : > { %487 = vst.msk [vmem:[#allocation2 + $0xa8] sm:$0x7f] %vm480_vm12, %v472_v42 }
 0x1a5   : > { %533 = vst.msk [vmem:[#allocation2 + $0xa8] sm:$0xfe] %vm525_vm13, %v516_v43  ;;  %v706_v44 = vld [vmem:[#allocation2 + $0x98] sm:$0xff] }
 0x1a6   : > { %542 = vst.msk [vmem:[#allocation2 + $0xa8] sm:$0x1] %vm534_vm6, %v1238_v12  ;;  %v705_v45 = vld [vmem:[#allocation2 + $0x90] sm:$0xff]  ;;  %872 = vmatprep.mubr.f32.mxu1 %v706_v44 }
 0x1a7   : > { %873 = vmatmul.mubr.f32.gmra.mxu1 %v705_v45 }
 0x1a9   : > { %v1208_v49 = vpop.f32.mrf.mxu0 }
 0x1aa   : > { %v709_v46 = vld [vmem:[#allocation2 + $0xb0] sm:$0xff] }
 0x1ab   : > { %877 = vmatprep.mubr.f32.mxu1 %v709_v46  ;;  %v949_v53 = vpop.f32.mrf.mxu0 }
 0x1ad   : > { %v708_v47 = vld [vmem:[#allocation2 + $0xa8] sm:$0xff]  ;;  %v1211_v0 = vpop.f32.mrf.mxu0 }
 0x1ae   : > { %878 = vmatmul.mubr.f32.gmra.mxu1 %v708_v47 }
 0x1af   : > { %v959_v13 = vpop.f32.mrf.mxu0 }
 0x1b1   : > { %v1214_v24 = vpop.f32.mrf.mxu0 }
 0x1b3   : > { %v969_v27 = vpop.f32.mrf.mxu0 }
 0x1b5   : > { %v1217_v35 = vpop.f32.mrf.mxu0 }
 0x1b7   : > { %v979_v40 = vpop.f32.mrf.mxu0 }
 0x228   : > { %v1142_v48 = vpop.f32.mrf.mxu1 }
 0x22a   : > { %v1143_v51 = vpop.f32.mrf.mxu1 }
 0x22b   : > { %v1144_v52 = vadd.f32 %v1143_v51, %v1142_v48 }
 0x22d   : > { %v845_v12 = vadd.f32 %v1144_v52, %v1784_v50 }
 0x22f   : > { %v950_v54 = vadd.f32 %v949_v53, %v845_v12 }
 0x231   : > { %v988_v55 = vadd.f32 %v950_v54, %v1300_v4 }
 0x233   : > { %v996_v56 = vmax.f32 %v988_v55, 0.0 }
 0x235   : > { %v1145_v57 = vpop.f32.mrf.mxu1  ;;  %1004 = vst.msk [vmem:[%s1793_s24] sm:$0xff] %vm244_vm0, %v996_v56 }
 0x237   : > { %v1146_v58 = vpop.f32.mrf.mxu1 }
 0x238   : > { %v1147_v59 = vadd.f32 %v1146_v58, %v1145_v57 }
 0x23a   : > { %v850_v60 = vadd.f32 %v1147_v59, %v1784_v50 }
 0x23c   : > { %v955_v61 = vadd.f32 %v1208_v49, %v850_v60 }
 0x23e   : > { %v989_v4 = vadd.f32 %v955_v61, %v1302_v5 }
 0x240   : > { %v997_v62 = vmax.f32 %v989_v4, 0.0  ;;  %v1148_v63 = vpop.f32.mrf.mxu1 }
 0x242   : > { %1005 = vst.msk [vmem:[%s1793_s24 + $0x8] sm:$0xff] %vm244_vm0, %v997_v62  ;;  %v1149_v1 = vpop.f32.mrf.mxu1 }
 0x243   : > { %v1150_v2 = vadd.f32 %v1149_v1, %v1148_v63 }
 0x245   : > { %v855_v3 = vadd.f32 %v1150_v2, %v1784_v50 }
 0x247   : > { %v960_v14 = vadd.f32 %v959_v13, %v855_v3 }
 0x249   : > { %v990_v15 = vadd.f32 %v960_v14, %v1306_v6 }
 0x24b   : > { %v998_v16 = vmax.f32 %v990_v15, 0.0 }
 0x24d   : > { %v1151_v17 = vpop.f32.mrf.mxu1  ;;  %1006 = vst.msk [vmem:[%s1793_s24 + $0x10] sm:$0xff] %vm244_vm0, %v998_v16 }
 0x24f   : > { %v1152_v18 = vpop.f32.mrf.mxu1 }
 0x250   : > { %v1153_v5 = vadd.f32 %v1152_v18, %v1151_v17 }
 0x252   : > { %v860_v19 = vadd.f32 %v1153_v5, %v1784_v50 }
 0x254   : > { %v965_v20 = vadd.f32 %v1211_v0, %v860_v19 }
 0x256   : > { %v991_v21 = vadd.f32 %v965_v20, %v1312_v7 }
 0x258   : > { %v999_v22 = vmax.f32 %v991_v21, 0.0  ;;  %v1154_v23 = vpop.f32.mrf.mxu1 }
 0x25a   : > { %1007 = vst.msk [vmem:[%s1793_s24 + $0x18] sm:$0xff] %vm244_vm0, %v999_v22  ;;  %v1155_v25 = vpop.f32.mrf.mxu1 }
 0x25b   : > { %v1156_v26 = vadd.f32 %v1155_v25, %v1154_v23 }
 0x25d   : > { %v865_v6 = vadd.f32 %v1156_v26, %v1784_v50 }
 0x25f   : > { %v970_v29 = vadd.f32 %v969_v27, %v865_v6 }
 0x261   : > { %v1157_v28 = vpop.f32.mrf.mxu1  ;;  %v992_v30 = vadd.f32 %v970_v29, %v1314_v8 }
 0x263   : > { %v1158_v31 = vpop.f32.mrf.mxu1  ;;  %v1000_v32 = vmax.f32 %v992_v30, 0.0 }
 0x264   : > { %v1159_v33 = vadd.f32 %v1158_v31, %v1157_v28 }
 0x265   : > { %1008 = vst.msk [vmem:[%s1793_s24 + $0x20] sm:$0xff] %vm244_vm0, %v1000_v32 }
 0x266   : > { %v870_v7 = vadd.f32 %v1159_v33, %v1784_v50 }
 0x267   : > { %v1160_v34 = vpop.f32.mrf.mxu1 }
 0x268   : > { %v975_v36 = vadd.f32 %v1214_v24, %v870_v7 }
 0x269   : > { %v1161_v37 = vpop.f32.mrf.mxu1 }
 0x26a   : > { %v1162_v38 = vadd.f32 %v1161_v37, %v1160_v34  ;;  %v993_v39 = vadd.f32 %v975_v36, %v1320_v9 }
 0x26c   : > { %v875_v8 = vadd.f32 %v1162_v38, %v1784_v50  ;;  %v1001_v41 = vmax.f32 %v993_v39, 0.0 }
 0x26e   : > { %v1163_v42 = vpop.f32.mrf.mxu1  ;;  %v980_v43 = vadd.f32 %v979_v40, %v875_v8  ;;  %1009 = vst.msk [vmem:[%s1793_s24 + $0x28] sm:$0xff] %vm244_vm0, %v1001_v41 }
 0x270   : > { %v1164_v44 = vpop.f32.mrf.mxu1  ;;  %v994_v45 = vadd.f32 %v980_v43, %v1322_v10 }
 0x271   : > { %v1165_v46 = vadd.f32 %v1164_v44, %v1163_v42 }
 0x272   : > { %v1002_v47 = vmax.f32 %v994_v45, 0.0 }
 0x273   : > { %v880_v48 = vadd.f32 %v1165_v46, %v1784_v50 }
 0x274   : > { %1010 = vst.msk [vmem:[%s1793_s24 + $0x30] sm:$0xff] %vm244_vm0, %v1002_v47 }
 0x275   : > { %v985_v49 = vadd.f32 %v1217_v35, %v880_v48 }
 0x277   : > { %v995_v9 = vadd.f32 %v985_v49, %v1328_v11 }
 0x279   : > { %v1003_v51 = vmax.f32 %v995_v9, 0.0 }
 0x27b   : > { %1011 = vst.msk [vmem:[%s1793_s24 + $0x38] sm:$0xff] %vm244_vm0, %v1003_v51 }
 0x27c PF: > { %s15_s18 = sadd.s32 1, %s1236_s18  }
 0x27d   : > { %p12_p4 = scmp.ge.s32.totalorder %s15_s18, 4  }
 0x27f   :  { %14 = sbr.rel (!%p12_p4) target bundleno = 1 (0x1), region = 72 }

</bundles_post_ra>
